<compile_context>
chip_gen: v7x
topology: tpu7x:2x2x1
jax: 0.10.0
libtpu: 0.0.40
codegen_flags: <defaults>
</compile_context>

<pallas_src>
import jax
import jax.numpy as jnp
from jax.experimental import pallas as pl
from jax.experimental.pallas import tpu as pltpu

EMBEDDING_DIM = 32
ATTENTION_HEADS = 4
HEAD_DIM = EMBEDDING_DIM // ATTENTION_HEADS
SEQ = 8
BATCH = 2
LN_EPS = 1e-5
NEG_INF = -1e30  # finite large-negative mask: NaN-safe, exp() underflows to exactly 0


def _layer_norm(v, gamma, beta):
    mean = jnp.mean(v, axis=-1, keepdims=True)
    var = jnp.mean((v - mean) ** 2, axis=-1, keepdims=True)
    return (v - mean) * jax.lax.rsqrt(var + LN_EPS) * gamma + beta


def _gelu_exact(v):
    # nn.GELU() default: exact erf formulation
    return 0.5 * v * (1.0 + jax.lax.erf(v / jnp.sqrt(2.0).astype(v.dtype)))


def decoder_block_kernel(
    x_ref,                       # (B, S, D)
    ln_g_ref, ln_b_ref,          # (1, D) each (shared LayerNorm params)
    wqkv_ref, bqkv_ref,          # (D, 3D), (1, 3D)  [Q | K | V] blocks, scale folded into Q
    wo_ref, bo_ref,              # (D, D), (1, D)
    w1_ref, b1_ref,              # (D, 4D), (1, 4D)
    w2_ref, b2_ref,              # (4D, D), (1, D)
    o_ref,                       # (B, S, D)
):
    B, S, D = x_ref.shape
    H, HD = ATTENTION_HEADS, HEAD_DIM

    gamma = ln_g_ref[...]
    beta = ln_b_ref[...]

    x = x_ref[...].reshape(B * S, D)                # flatten batch into sublanes

    # ---- self-attention branch -------------------------------------------
    h = _layer_norm(x, gamma, beta)                 # (B*S, D)

    # Single fused QKV projection; 1/sqrt(HD) already folded into Q columns.
    qkv = jnp.dot(h, wqkv_ref[...], preferred_element_type=jnp.float32) + bqkv_ref[...]

    # Aligned D-wide slices, then one head-major relayout per tensor.
    def to_heads(t):                                # (B*S, D) -> (B*H, S, HD)
        return t.reshape(B, S, H, HD).transpose(0, 2, 1, 3).reshape(B * H, S, HD)

    q = to_heads(qkv[:, 0:D])
    k = to_heads(qkv[:, D:2 * D])
    v = to_heads(qkv[:, 2 * D:3 * D])

    # Causal mask built once as (S, S); broadcast over the (B*H) batch axis.
    row = jax.lax.broadcasted_iota(jnp.int32, (S, S), 0)
    col = jax.lax.broadcasted_iota(jnp.int32, (S, S), 1)
    neg_mask = jnp.where(col <= row, 0.0, NEG_INF).astype(jnp.float32)

    # Batched attention over all (batch, head) pairs at once.
    s = jnp.einsum('gqd,gkd->gqk', q, k,
                   preferred_element_type=jnp.float32) + neg_mask      # (B*H, S, S)
    s = s - jnp.max(s, axis=-1, keepdims=True)
    p = jnp.exp(s)
    p = p / jnp.sum(p, axis=-1, keepdims=True)      # exact divide: parity with reference

    o = jnp.einsum('gqk,gkd->gqd', p, v,
                   preferred_element_type=jnp.float32)                 # (B*H, S, HD)

    # Re-concat heads along lanes with a single relayout: (B*H,S,HD) -> (B*S, D)
    heads_cat = o.reshape(B, H, S, HD).transpose(0, 2, 1, 3).reshape(B * S, D)

    attn = jnp.dot(heads_cat, wo_ref[...],
                   preferred_element_type=jnp.float32) + bo_ref[...]
    x1 = x + attn                                   # residual 1

    # ---- MLP branch --------------------------------------------------------
    h2 = _layer_norm(x1, gamma, beta)
    f = jnp.dot(h2, w1_ref[...], preferred_element_type=jnp.float32) + b1_ref[...]
    g = _gelu_exact(f)
    proj = jnp.dot(g, w2_ref[...], preferred_element_type=jnp.float32) + b2_ref[...]

    o_ref[...] = (x1 + proj).reshape(B, S, D)       # residual 2


def prepare_params(params):
    """One-time parameter transform (hoisted out of the per-call path):
    concatenate Q/K/V into plain [Q | K | V] blocks of a (D, 3D) weight and
    fold the 1/sqrt(HEAD_DIM) attention scale into the Q columns/bias."""
    (ln_g, ln_b, wq, bq, wk, bk, wv, bv, wo, bo, w1, b1, w2, b2) = params
    scale = jnp.float32(1.0 / (HEAD_DIM ** 0.5))
    wqkv = jnp.concatenate([wq * scale, wk, wv], axis=1)   # (D, 3D)
    bqkv = jnp.concatenate([bq * scale, bk, bv], axis=1)   # (1, 3D)
    return (ln_g, ln_b, wqkv, bqkv, wo, bo, w1, b1, w2, b2)


def decoder_block(x, prepared):
    (ln_g, ln_b, wqkv, bqkv, wo, bo, w1, b1, w2, b2) = prepared
    B, S, D = x.shape
    F = 4 * D

    # Single grid step covering the whole (tiny) batch on every generation:
    # splitting across cores at this size only duplicates weight DMA + step
    # overhead and worsens MXU padding.
    def full_spec(shape):
        return pl.BlockSpec(shape, lambda b: tuple(0 for _ in shape))

    in_specs = [
        pl.BlockSpec((B, S, D), lambda b: (0, 0, 0)),     # x
        full_spec((1, D)), full_spec((1, D)),             # ln gamma / beta
        full_spec((D, 3 * D)), full_spec((1, 3 * D)),     # fused Wqkv, bqkv
        full_spec((D, D)), full_spec((1, D)),             # Wo, bo
        full_spec((D, F)), full_spec((1, F)),             # W1, b1
        full_spec((F, D)), full_spec((1, D)),             # W2, b2
    ]

    return pl.pallas_call(
        decoder_block_kernel,
        out_shape=jax.ShapeDtypeStruct((B, S, D), jnp.float32),
        grid_spec=pltpu.PrefetchScalarGridSpec(
            num_scalar_prefetch=0,
            grid=(1,),
            in_specs=in_specs,
            out_specs=pl.BlockSpec((B, S, D), lambda b: (0, 0, 0)),
        ),
        compiler_params=pltpu.CompilerParams(
            dimension_semantics=("arbitrary",),
        ),
    )(x, ln_g, ln_b, wqkv, bqkv, wo, bo, w1, b1, w2, b2)


# ---------------------------------------------------------------------------
# Pure-JAX reference (same math, unfused) for a correctness check.
# ---------------------------------------------------------------------------
def decoder_block_ref(x, params):
    (ln_g, ln_b, wq, bq, wk, bk, wv, bv, wo, bo, w1, b1, w2, b2) = params

    def ln(v):
        return _layer_norm(v, ln_g, ln_b)

    h = ln(x)
    q = h @ wq + bq
    k = h @ wk + bk
    v = h @ wv + bv
    S = x.shape[1]
    causal = jnp.tril(jnp.ones((S, S), dtype=bool))
    outs = []
    for hh in range(ATTENTION_HEADS):
        lo, hi = hh * HEAD_DIM, (hh + 1) * HEAD_DIM
        s = q[:, :, lo:hi] @ jnp.swapaxes(k[:, :, lo:hi], -2, -1) / jnp.sqrt(
            jnp.float32(HEAD_DIM))
        s = jnp.where(causal, s, -jnp.inf)
        p = jax.nn.softmax(s, axis=-1)
        outs.append(p @ v[:, :, lo:hi])
    attn = jnp.concatenate(outs, axis=-1) @ wo + bo
    x1 = x + attn
    h2 = ln(x1)
    f = h2 @ w1 + b1
    g = _gelu_exact(f)
    return x1 + g @ w2 + b2


def make_params(key):
    D, F = EMBEDDING_DIM, 4 * EMBEDDING_DIM
    ks = jax.random.split(key, 16)
    n = lambda k, shape, s=0.05: (jax.random.normal(k, shape, jnp.float32) * s)
    ln_g = 1.0 + n(ks[0], (1, D), 0.02)
    ln_b = n(ks[1], (1, D), 0.02)
    wq, bq = n(ks[2], (D, D)), n(ks[3], (1, D))
    wk, bk = n(ks[4], (D, D)), n(ks[5], (1, D))
    wv, bv = n(ks[6], (D, D)), n(ks[7], (1, D))
    wo, bo = n(ks[8], (D, D)), n(ks[9], (1, D))
    w1, b1 = n(ks[10], (D, F)), n(ks[11], (1, F))
    w2, b2 = n(ks[12], (F, D)), n(ks[13], (1, D))
    return (ln_g, ln_b, wq, bq, wk, bk, wv, bv, wo, bo, w1, b1, w2, b2)


if __name__ == "__main__":
    key = jax.random.PRNGKey(0)
    kx, kp = jax.random.split(key)
    x = jax.random.normal(kx, (BATCH, SEQ, EMBEDDING_DIM), jnp.float32)
    params = make_params(kp)
    prepared = prepare_params(params)   # one-time weight fusion (not per call)

    out = decoder_block(x, prepared)
    out = jax.block_until_ready(out)

    ref = decoder_block_ref(x, params)
    assert out.shape == (BATCH, SEQ, EMBEDDING_DIM)
    # Exact softmax divide restored: tolerance tightened vs. the approx-recip
    # version (remaining diff is f32 matmul rounding-order only).
    max_err = jnp.max(jnp.abs(out - ref))
    assert jnp.allclose(out, ref, atol=1e-3, rtol=1e-3), f"max abs err {max_err}"
    print("KERNEL_OK")
</pallas_src>

<mosaic_0001>
module attributes {stable_mosaic.version = 11 : i64} {
  func.func @decoder_block_kernel(%arg0: i32, %arg1: memref<2x8x32xf32, #tpu.memory_space<vmem>>, %arg2: memref<1x32xf32, #tpu.memory_space<vmem>>, %arg3: memref<1x32xf32, #tpu.memory_space<vmem>>, %arg4: memref<32x96xf32, #tpu.memory_space<vmem>>, %arg5: memref<1x96xf32, #tpu.memory_space<vmem>>, %arg6: memref<32x32xf32, #tpu.memory_space<vmem>>, %arg7: memref<1x32xf32, #tpu.memory_space<vmem>>, %arg8: memref<32x128xf32, #tpu.memory_space<vmem>>, %arg9: memref<1x128xf32, #tpu.memory_space<vmem>>, %arg10: memref<128x32xf32, #tpu.memory_space<vmem>>, %arg11: memref<1x32xf32, #tpu.memory_space<vmem>>, %arg12: memref<2x8x32xf32, #tpu.memory_space<vmem>>) attributes {dimension_semantics = [#tpu.dimension_semantics<arbitrary>], iteration_bounds = array<i64: 1>, scalar_prefetch = 0 : i64, scratch_operands = 0 : i64, tpu.core_type = #tpu.core_type<tc>, window_params = [{pipeline_mode = #tpu.pipeline_mode<synchronous>, transform_indices = @transform_0, window_bounds = array<i64: 2, 8, 32>}, {pipeline_mode = #tpu.pipeline_mode<synchronous>, transform_indices = @transform_1, window_bounds = array<i64: 1, 32>}, {pipeline_mode = #tpu.pipeline_mode<synchronous>, transform_indices = @transform_2, window_bounds = array<i64: 1, 32>}, {pipeline_mode = #tpu.pipeline_mode<synchronous>, transform_indices = @transform_3, window_bounds = array<i64: 32, 96>}, {pipeline_mode = #tpu.pipeline_mode<synchronous>, transform_indices = @transform_4, window_bounds = array<i64: 1, 96>}, {pipeline_mode = #tpu.pipeline_mode<synchronous>, transform_indices = @transform_5, window_bounds = array<i64: 32, 32>}, {pipeline_mode = #tpu.pipeline_mode<synchronous>, transform_indices = @transform_6, window_bounds = array<i64: 1, 32>}, {pipeline_mode = #tpu.pipeline_mode<synchronous>, transform_indices = @transform_7, window_bounds = array<i64: 32, 128>}, {pipeline_mode = #tpu.pipeline_mode<synchronous>, transform_indices = @transform_8, window_bounds = array<i64: 1, 128>}, {pipeline_mode = #tpu.pipeline_mode<synchronous>, transform_indices = @transform_9, window_bounds = array<i64: 128, 32>}, {pipeline_mode = #tpu.pipeline_mode<synchronous>, transform_indices = @transform_10, window_bounds = array<i64: 1, 32>}, {pipeline_mode = #tpu.pipeline_mode<synchronous>, transform_indices = @transform_11, window_bounds = array<i64: 2, 8, 32>}]} {
    %c0 = arith.constant 0 : index
    %c0_0 = arith.constant 0 : index
    %0 = vector.load %arg2[%c0, %c0_0] : memref<1x32xf32, #tpu.memory_space<vmem>>, vector<1x32xf32>
    %c0_1 = arith.constant 0 : index
    %c0_2 = arith.constant 0 : index
    %1 = vector.load %arg3[%c0_1, %c0_2] : memref<1x32xf32, #tpu.memory_space<vmem>>, vector<1x32xf32>
    %c0_3 = arith.constant 0 : index
    %c0_4 = arith.constant 0 : index
    %c0_5 = arith.constant 0 : index
    %2 = vector.load %arg1[%c0_3, %c0_4, %c0_5] : memref<2x8x32xf32, #tpu.memory_space<vmem>>, vector<2x8x32xf32>
    %3 = vector.shape_cast %2 : vector<2x8x32xf32> to vector<16x32xf32>
    %cst = arith.constant dense<0.000000e+00> : vector<16xf32>
    %4 = vector.multi_reduction <add>, %3, %cst [1] : vector<16x32xf32> to vector<16xf32>
    %5 = vector.shape_cast %4 : vector<16xf32> to vector<16x1xf32>
    %cst_6 = arith.constant 3.200000e+01 : f32
    %6 = vector.broadcast %cst_6 : f32 to vector<16x1xf32>
    %7 = arith.divf %5, %6 : vector<16x1xf32>
    %8 = vector.broadcast %7 : vector<16x1xf32> to vector<16x32xf32>
    %9 = arith.subf %3, %8 : vector<16x32xf32>
    %10 = arith.mulf %9, %9 : vector<16x32xf32>
    %cst_7 = arith.constant dense<0.000000e+00> : vector<16xf32>
    %11 = vector.multi_reduction <add>, %10, %cst_7 [1] : vector<16x32xf32> to vector<16xf32>
    %12 = vector.shape_cast %11 : vector<16xf32> to vector<16x1xf32>
    %cst_8 = arith.constant 3.200000e+01 : f32
    %13 = vector.broadcast %cst_8 : f32 to vector<16x1xf32>
    %14 = arith.divf %12, %13 : vector<16x1xf32>
    %15 = vector.broadcast %7 : vector<16x1xf32> to vector<16x32xf32>
    %16 = arith.subf %3, %15 : vector<16x32xf32>
    %cst_9 = arith.constant 9.99999974E-6 : f32
    %17 = vector.broadcast %cst_9 : f32 to vector<16x1xf32>
    %18 = arith.addf %14, %17 : vector<16x1xf32>
    %19 = math.rsqrt %18 : vector<16x1xf32>
    %20 = vector.broadcast %19 : vector<16x1xf32> to vector<16x32xf32>
    %21 = arith.mulf %16, %20 : vector<16x32xf32>
    %22 = vector.broadcast %0 : vector<1x32xf32> to vector<16x32xf32>
    %23 = arith.mulf %21, %22 : vector<16x32xf32>
    %24 = vector.broadcast %1 : vector<1x32xf32> to vector<16x32xf32>
    %25 = arith.addf %23, %24 : vector<16x32xf32>
    %c0_10 = arith.constant 0 : index
    %c0_11 = arith.constant 0 : index
    %26 = vector.load %arg4[%c0_10, %c0_11] : memref<32x96xf32, #tpu.memory_space<vmem>>, vector<32x96xf32>
    %cst_12 = arith.constant dense<0.000000e+00> : vector<16x96xf32>
    %27 = tpu.matmul %25, %26, %cst_12 {dimension_numbers = #tpu.dot_dimension_numbers<[1], [0], [0], [1], [0, 0, 1, 1], [], []>} : vector<16x32xf32>, vector<32x96xf32>, vector<16x96xf32> -> vector<16x96xf32>
    %c0_13 = arith.constant 0 : index
    %c0_14 = arith.constant 0 : index
    %28 = vector.load %arg5[%c0_13, %c0_14] : memref<1x96xf32, #tpu.memory_space<vmem>>, vector<1x96xf32>
    %29 = vector.broadcast %28 : vector<1x96xf32> to vector<16x96xf32>
    %30 = arith.addf %27, %29 : vector<16x96xf32>
    %31 = vector.extract_strided_slice %30 {offsets = [0, 0], sizes = [16, 32], strides = [1, 1]} : vector<16x96xf32> to vector<16x32xf32>
    %32 = vector.shape_cast %31 : vector<16x32xf32> to vector<2x8x4x8xf32>
    %33 = tpu.transpose %32, [0, 2, 1, 3] : vector<2x8x4x8xf32> -> vector<2x4x8x8xf32>
    %34 = vector.shape_cast %33 : vector<2x4x8x8xf32> to vector<8x8x8xf32>
    %35 = vector.extract_strided_slice %30 {offsets = [0, 32], sizes = [16, 32], strides = [1, 1]} : vector<16x96xf32> to vector<16x32xf32>
    %36 = vector.shape_cast %35 : vector<16x32xf32> to vector<2x8x4x8xf32>
    %37 = tpu.transpose %36, [0, 2, 1, 3] : vector<2x8x4x8xf32> -> vector<2x4x8x8xf32>
    %38 = vector.shape_cast %37 : vector<2x4x8x8xf32> to vector<8x8x8xf32>
    %39 = vector.extract_strided_slice %30 {offsets = [0, 64], sizes = [16, 32], strides = [1, 1]} : vector<16x96xf32> to vector<16x32xf32>
    %40 = vector.shape_cast %39 : vector<16x32xf32> to vector<2x8x4x8xf32>
    %41 = tpu.transpose %40, [0, 2, 1, 3] : vector<2x8x4x8xf32> -> vector<2x4x8x8xf32>
    %42 = vector.shape_cast %41 : vector<2x4x8x8xf32> to vector<8x8x8xf32>
    %43 = tpu.iota {dimensions = array<i32: 0>} : vector<8x8xi32>
    %44 = tpu.iota {dimensions = array<i32: 1>} : vector<8x8xi32>
    %45 = arith.cmpi sle, %44, %43 : vector<8x8xi32>
    %cst_15 = arith.constant 0.000000e+00 : f32
    %cst_16 = arith.constant -1.000000e+30 : f32
    %46 = vector.broadcast %cst_15 : f32 to vector<8x8xf32>
    %47 = vector.broadcast %cst_16 : f32 to vector<8x8xf32>
    %48 = arith.select %45, %46, %47 : vector<8x8xi1>, vector<8x8xf32>
    "tpu.trace_start"() <{level = 10 : i32, message = "gqd,gkd->gqk"}> : () -> ()
    %cst_17 = arith.constant dense<0.000000e+00> : vector<8x8x8xf32>
    %49 = tpu.matmul %34, %38, %cst_17 {dimension_numbers = #tpu.dot_dimension_numbers<[2], [2], [1], [1], [0, 0, 0, 1, 1, 1], [0], [0]>} : vector<8x8x8xf32>, vector<8x8x8xf32>, vector<8x8x8xf32> -> vector<8x8x8xf32>
    "tpu.trace_stop"() : () -> ()
    %50 = vector.shape_cast %48 : vector<8x8xf32> to vector<1x8x8xf32>
    %51 = vector.broadcast %50 : vector<1x8x8xf32> to vector<8x8x8xf32>
    %52 = arith.addf %49, %51 : vector<8x8x8xf32>
    %cst_18 = arith.constant dense<0xFF800000> : vector<8x8xf32>
    %53 = vector.multi_reduction <maximumf>, %52, %cst_18 [2] : vector<8x8x8xf32> to vector<8x8xf32>
    %54 = vector.shape_cast %53 : vector<8x8xf32> to vector<8x8x1xf32>
    %55 = vector.broadcast %54 : vector<8x8x1xf32> to vector<8x8x8xf32>
    %56 = arith.subf %52, %55 : vector<8x8x8xf32>
    %57 = math.exp %56 : vector<8x8x8xf32>
    %cst_19 = arith.constant dense<0.000000e+00> : vector<8x8xf32>
    %58 = vector.multi_reduction <add>, %57, %cst_19 [2] : vector<8x8x8xf32> to vector<8x8xf32>
    %59 = vector.shape_cast %58 : vector<8x8xf32> to vector<8x8x1xf32>
    %60 = vector.broadcast %59 : vector<8x8x1xf32> to vector<8x8x8xf32>
    %61 = arith.divf %57, %60 : vector<8x8x8xf32>
    "tpu.trace_start"() <{level = 10 : i32, message = "gqk,gkd->gqd"}> : () -> ()
    %cst_20 = arith.constant dense<0.000000e+00> : vector<8x8x8xf32>
    %62 = tpu.matmul %61, %42, %cst_20 {dimension_numbers = #tpu.dot_dimension_numbers<[2], [1], [1], [2], [0, 0, 0, 1, 1, 2], [0], [0]>} : vector<8x8x8xf32>, vector<8x8x8xf32>, vector<8x8x8xf32> -> vector<8x8x8xf32>
    "tpu.trace_stop"() : () -> ()
    %63 = vector.shape_cast %62 : vector<8x8x8xf32> to vector<2x4x8x8xf32>
    %64 = tpu.transpose %63, [0, 2, 1, 3] : vector<2x4x8x8xf32> -> vector<2x8x4x8xf32>
    %65 = vector.shape_cast %64 : vector<2x8x4x8xf32> to vector<16x32xf32>
    %c0_21 = arith.constant 0 : index
    %c0_22 = arith.constant 0 : index
    %66 = vector.load %arg6[%c0_21, %c0_22] : memref<32x32xf32, #tpu.memory_space<vmem>>, vector<32x32xf32>
    %cst_23 = arith.constant dense<0.000000e+00> : vector<16x32xf32>
    %67 = tpu.matmul %65, %66, %cst_23 {dimension_numbers = #tpu.dot_dimension_numbers<[1], [0], [0], [1], [0, 0, 1, 1], [], []>} : vector<16x32xf32>, vector<32x32xf32>, vector<16x32xf32> -> vector<16x32xf32>
    %c0_24 = arith.constant 0 : index
    %c0_25 = arith.constant 0 : index
    %68 = vector.load %arg7[%c0_24, %c0_25] : memref<1x32xf32, #tpu.memory_space<vmem>>, vector<1x32xf32>
    %69 = vector.broadcast %68 : vector<1x32xf32> to vector<16x32xf32>
    %70 = arith.addf %67, %69 : vector<16x32xf32>
    %71 = arith.addf %3, %70 : vector<16x32xf32>
    %cst_26 = arith.constant dense<0.000000e+00> : vector<16xf32>
    %72 = vector.multi_reduction <add>, %71, %cst_26 [1] : vector<16x32xf32> to vector<16xf32>
    %73 = vector.shape_cast %72 : vector<16xf32> to vector<16x1xf32>
    %cst_27 = arith.constant 3.200000e+01 : f32
    %74 = vector.broadcast %cst_27 : f32 to vector<16x1xf32>
    %75 = arith.divf %73, %74 : vector<16x1xf32>
    %76 = vector.broadcast %75 : vector<16x1xf32> to vector<16x32xf32>
    %77 = arith.subf %71, %76 : vector<16x32xf32>
    %78 = arith.mulf %77, %77 : vector<16x32xf32>
    %cst_28 = arith.constant dense<0.000000e+00> : vector<16xf32>
    %79 = vector.multi_reduction <add>, %78, %cst_28 [1] : vector<16x32xf32> to vector<16xf32>
    %80 = vector.shape_cast %79 : vector<16xf32> to vector<16x1xf32>
    %cst_29 = arith.constant 3.200000e+01 : f32
    %81 = vector.broadcast %cst_29 : f32 to vector<16x1xf32>
    %82 = arith.divf %80, %81 : vector<16x1xf32>
    %83 = vector.broadcast %75 : vector<16x1xf32> to vector<16x32xf32>
    %84 = arith.subf %71, %83 : vector<16x32xf32>
    %cst_30 = arith.constant 9.99999974E-6 : f32
    %85 = vector.broadcast %cst_30 : f32 to vector<16x1xf32>
    %86 = arith.addf %82, %85 : vector<16x1xf32>
    %87 = math.rsqrt %86 : vector<16x1xf32>
    %88 = vector.broadcast %87 : vector<16x1xf32> to vector<16x32xf32>
    %89 = arith.mulf %84, %88 : vector<16x32xf32>
    %90 = vector.broadcast %0 : vector<1x32xf32> to vector<16x32xf32>
    %91 = arith.mulf %89, %90 : vector<16x32xf32>
    %92 = vector.broadcast %1 : vector<1x32xf32> to vector<16x32xf32>
    %93 = arith.addf %91, %92 : vector<16x32xf32>
    %c0_31 = arith.constant 0 : index
    %c0_32 = arith.constant 0 : index
    %94 = vector.load %arg8[%c0_31, %c0_32] : memref<32x128xf32, #tpu.memory_space<vmem>>, vector<32x128xf32>
    %cst_33 = arith.constant dense<0.000000e+00> : vector<16x128xf32>
    %95 = tpu.matmul %93, %94, %cst_33 {dimension_numbers = #tpu.dot_dimension_numbers<[1], [0], [0], [1], [0, 0, 1, 1], [], []>} : vector<16x32xf32>, vector<32x128xf32>, vector<16x128xf32> -> vector<16x128xf32>
    %c0_34 = arith.constant 0 : index
    %c0_35 = arith.constant 0 : index
    %96 = vector.load %arg9[%c0_34, %c0_35] : memref<1x128xf32, #tpu.memory_space<vmem>>, vector<1x128xf32>
    %97 = vector.broadcast %96 : vector<1x128xf32> to vector<16x128xf32>
    %98 = arith.addf %95, %97 : vector<16x128xf32>
    %cst_36 = arith.constant 5.000000e-01 : f32
    %99 = vector.broadcast %cst_36 : f32 to vector<16x128xf32>
    %100 = arith.mulf %99, %98 : vector<16x128xf32>
    %cst_37 = arith.constant 2.000000e+00 : f32
    %101 = math.sqrt %cst_37 : f32
    %102 = vector.broadcast %101 : f32 to vector<16x128xf32>
    %103 = arith.divf %98, %102 : vector<16x128xf32>
    %104 = math.erf %103 : vector<16x128xf32>
    %cst_38 = arith.constant 1.000000e+00 : f32
    %105 = vector.broadcast %cst_38 : f32 to vector<16x128xf32>
    %106 = arith.addf %105, %104 : vector<16x128xf32>
    %107 = arith.mulf %100, %106 : vector<16x128xf32>
    %c0_39 = arith.constant 0 : index
    %c0_40 = arith.constant 0 : index
    %108 = vector.load %arg10[%c0_39, %c0_40] : memref<128x32xf32, #tpu.memory_space<vmem>>, vector<128x32xf32>
    %cst_41 = arith.constant dense<0.000000e+00> : vector<16x32xf32>
    %109 = tpu.matmul %107, %108, %cst_41 {dimension_numbers = #tpu.dot_dimension_numbers<[1], [0], [0], [1], [0, 0, 1, 1], [], []>} : vector<16x128xf32>, vector<128x32xf32>, vector<16x32xf32> -> vector<16x32xf32>
    %c0_42 = arith.constant 0 : index
    %c0_43 = arith.constant 0 : index
    %110 = vector.load %arg11[%c0_42, %c0_43] : memref<1x32xf32, #tpu.memory_space<vmem>>, vector<1x32xf32>
    %111 = vector.broadcast %110 : vector<1x32xf32> to vector<16x32xf32>
    %112 = arith.addf %109, %111 : vector<16x32xf32>
    %113 = arith.addf %71, %112 : vector<16x32xf32>
    %114 = vector.shape_cast %113 : vector<16x32xf32> to vector<2x8x32xf32>
    %c0_44 = arith.constant 0 : index
    %c0_45 = arith.constant 0 : index
    %c0_46 = arith.constant 0 : index
    %115 = vector.load %arg12[%c0_44, %c0_45, %c0_46] : memref<2x8x32xf32, #tpu.memory_space<vmem>>, vector<2x8x32xf32>
    tpu.vector_store %arg12[%c0_44, %c0_45, %c0_46], %114 {strides = array<i32>} : memref<2x8x32xf32, #tpu.memory_space<vmem>>, vector<2x8x32xf32>,
    return
  }
  func.func @transform_0(%arg0: i32) -> (i32, i32, i32) {
    %c0_i32 = arith.constant 0 : i32
    %c0_i32_0 = arith.constant 0 : i32
    %c0_i32_1 = arith.constant 0 : i32
    %c0_i32_2 = arith.constant 0 : i32
    return %c0_i32, %c0_i32_0, %c0_i32_1 : i32, i32, i32
  }
  func.func @transform_1(%arg0: i32) -> (i32, i32) {
    %c0_i32 = arith.constant 0 : i32
    %c0_i32_0 = arith.constant 0 : i32
    %c0_i32_1 = arith.constant 0 : i32
    return %c0_i32, %c0_i32_0 : i32, i32
  }
  func.func @transform_2(%arg0: i32) -> (i32, i32) {
    %c0_i32 = arith.constant 0 : i32
    %c0_i32_0 = arith.constant 0 : i32
    %c0_i32_1 = arith.constant 0 : i32
    return %c0_i32, %c0_i32_0 : i32, i32
  }
  func.func @transform_3(%arg0: i32) -> (i32, i32) {
    %c0_i32 = arith.constant 0 : i32
    %c0_i32_0 = arith.constant 0 : i32
    %c0_i32_1 = arith.constant 0 : i32
    return %c0_i32, %c0_i32_0 : i32, i32
  }
  func.func @transform_4(%arg0: i32) -> (i32, i32) {
    %c0_i32 = arith.constant 0 : i32
    %c0_i32_0 = arith.constant 0 : i32
    %c0_i32_1 = arith.constant 0 : i32
    return %c0_i32, %c0_i32_0 : i32, i32
  }
  func.func @transform_5(%arg0: i32) -> (i32, i32) {
    %c0_i32 = arith.constant 0 : i32
    %c0_i32_0 = arith.constant 0 : i32
    %c0_i32_1 = arith.constant 0 : i32
    return %c0_i32, %c0_i32_0 : i32, i32
  }
  func.func @transform_6(%arg0: i32) -> (i32, i32) {
    %c0_i32 = arith.constant 0 : i32
    %c0_i32_0 = arith.constant 0 : i32
    %c0_i32_1 = arith.constant 0 : i32
    return %c0_i32, %c0_i32_0 : i32, i32
  }
  func.func @transform_7(%arg0: i32) -> (i32, i32) {
    %c0_i32 = arith.constant 0 : i32
    %c0_i32_0 = arith.constant 0 : i32
    %c0_i32_1 = arith.constant 0 : i32
    return %c0_i32, %c0_i32_0 : i32, i32
  }
  func.func @transform_8(%arg0: i32) -> (i32, i32) {
    %c0_i32 = arith.constant 0 : i32
    %c0_i32_0 = arith.constant 0 : i32
    %c0_i32_1 = arith.constant 0 : i32
    return %c0_i32, %c0_i32_0 : i32, i32
  }
  func.func @transform_9(%arg0: i32) -> (i32, i32) {
    %c0_i32 = arith.constant 0 : i32
    %c0_i32_0 = arith.constant 0 : i32
    %c0_i32_1 = arith.constant 0 : i32
    return %c0_i32, %c0_i32_0 : i32, i32
  }
  func.func @transform_10(%arg0: i32) -> (i32, i32) {
    %c0_i32 = arith.constant 0 : i32
    %c0_i32_0 = arith.constant 0 : i32
    %c0_i32_1 = arith.constant 0 : i32
    return %c0_i32, %c0_i32_0 : i32, i32
  }
  func.func @transform_11(%arg0: i32) -> (i32, i32, i32) {
    %c0_i32 = arith.constant 0 : i32
    %c0_i32_0 = arith.constant 0 : i32
    %c0_i32_1 = arith.constant 0 : i32
    %c0_i32_2 = arith.constant 0 : i32
    return %c0_i32, %c0_i32_0, %c0_i32_1 : i32, i32, i32
  }
}

</mosaic_0001>

<bundles_post_ra>
// kernel: tpu_custom_call.1
= control target key start
LH: loop header
LB: loop body
LE: loop exit
PB: predicated region body
PF: predicated region fallthrough
CT: control target
= control target key end

     0   :  { %vm43_vm0 = vcmask 261120   ;;  %s4012_s0 = inlined_call_operand.vmem [shape: f32[2,8,32], index: 0, kind: input, shape index: {}]   ;;  %s4013_s1 = inlined_call_operand.vmem [shape: f32[1,32], index: 1, kind: input, shape index: {}]   ;;  %s4014_s2 = inlined_call_operand.vmem [shape: f32[1,32], index: 2, kind: input, shape index: {}]   ;;  %s4015_s3 = inlined_call_operand.vmem [shape: f32[32,96], index: 3, kind: input, shape index: {}]   ;;  %s4016_s4 = inlined_call_operand.vmem [shape: f32[1,96], index: 4, kind: input, shape index: {}]   ;;  %s4017_s5 = inlined_call_operand.vmem [shape: f32[32,32], index: 5, kind: input, shape index: {}]   ;;  %s4018_s6 = inlined_call_operand.vmem [shape: f32[1,32], index: 6, kind: input, shape index: {}]   ;;  %s4019_s7 = inlined_call_operand.vmem [shape: f32[32,128], index: 7, kind: input, shape index: {}]   ;;  %s4020_s8 = inlined_call_operand.vmem [shape: f32[1,128], index: 8, kind: input, shape index: {}]   ;;  %s4021_s9 = inlined_call_operand.vmem [shape: f32[128,32], index: 9, kind: input, shape index: {}]   ;;  %s4022_s10 = inlined_call_operand.vmem [shape: f32[1,32], index: 10, kind: input, shape index: {}]   ;;  %s4023_s11 = inlined_call_operand.hbm [shape: f32[2,8,32], index: 11, kind: output, shape index: {}]  }
   0x1   :  { %v41_v0 = vld [vmem:[%s4012_s0] sm:$0xff]  ;;  %v42_v1 = vld [vmem:[%s4012_s0 + $0x8] sm:$0xff] }
   0x2   :  { %16 = vsyncpa [#allocation3], 0  ;;  %v44_v2 = vsel %vm43_vm0, %v41_v0, 0.0  ;;  %v47_v3 = vsel %vm43_vm0, %v42_v1, 0.0  ;;  %v87_v14 = vld [vmem:[%s4015_s3] sm:$0xff]  ;;  %v88_v15 = vld [vmem:[%s4015_s3 + $0x8] sm:$0xff]  ;;  %v204_v50 = vlaneseq }
   0x3   :  { %45 = vadd.xlane.f32.xlu0 %v44_v2  ;;  %v89_v16 = vld [vmem:[%s4015_s3 + $0x10] sm:$0xff]  ;;  %v3267_v17 = vpack.c.bf16 %v88_v15, %v87_v14  ;;  %v90_v18 = vld [vmem:[%s4015_s3 + $0x18] sm:$0xff]  ;;  %v2999_v27 = vld [vmem:[%s4013_s1] ss:$0 sm:$0xff]  ;;  %s3410_s15 = smov 112   ;;  %s3411_s16 = smov 120  }
   0x4   :  { %v3271_v19 = vpack.c.bf16 %v90_v18, %v89_v16  ;;  %v3000_v29 = vld [vmem:[%s4014_s2] ss:$0 sm:$0xff]  ;;  %s3412_s17 = smov 104   ;;  %v3414_v46 = vmov 0.0   ;;  %vm3415_vm1 = vmmov 0   ;;  %v3555_v52 = vshrl.u32 %v204_v50, 7 }
   0x5   :  { %3268 = vmatprep.subr.bf16.mxu1 %v3267_v17  ;;  %v3001_v36 = vld [vmem:[%s4016_s4] ss:$0 sm:$0xff]  ;;  %s3413_s4 = smov 96   ;;  %3140 = vmatprep.subr.mxu0 %v3414_v46  ;;  %v3416_v48 = vmov 1983009808   ;;  %vm1069_vm2 = vcmask 64512  }
   0x6   :  { %3270 = vmatpush3.bf16.msra.mxu1 %v3267_v17  ;;  %3142 = vmatprep.mubr.msk.f32.mxu0 %vm3415_vm1, %v3414_v46  ;;  %v202_v49 = vunpack.c.l.s4 %v3416_v48  ;;  %v3417_v53 = vmov 1934713408   ;;  %s3419_s18 = smov 64   ;;  %s3420_s19 = smov 8   ;;  %vm2648_vm4 = vcmask 130048   ;;  %vm2651_vm5 = vcmask 195584  }
   0x7   :  { %48 = vadd.xlane.f32.xlu0 %v47_v3  ;;  %3272 = vmatprep.subr.bf16.mxu1 %v3271_v19  ;;  %v234_v54 = vunpack.c.l.s4 %v3417_v53  ;;  %s3421_s20 = smov 16   ;;  %s3422_s21 = smov 24  }
   0x8   :  { %v203_v51 = vunpack.c.0.s8 %v202_v49  ;;  %s3423_s3 = smov [#allocation2]  }
   0x9   :  { %v235_v60 = vunpack.c.0.s8 %v234_v54  ;;  %s2988_s12 = sshll.u32 %s3423_s3, 4  ;;  %s2989_s12 = int_to_ptr.vmem [resolvable:$true] %s2988_s12 }
   0xa   :  { %3274 = vmatpush3.bf16.msra.mxu1 %v3271_v19  ;;  %v3562_v57 = vsub.s32 %v203_v51, %v3555_v52  ;;  %s3386_s13 = scalar_lea.vmem %s2989_s12, 256  ;;  %p3391_p1 = scmp.lt.s32.totalorder %s2989_s12, %s2989_s12 }
   0xb   :  { %3130 = vmatprep.subr.mxu1 %v3414_v46  ;;  %p3387_p0 = scmp.ne.s32.totalorder %s2989_s12, %s3386_s13  ;;  %p3392_p2 = scmp.lt.s32.totalorder %s3386_s13, %s3386_s13 }
   0xd   :  { %p3393_p3 = por %p3392_p2, %p3391_p1 }
   0xf   :  { %p3394_p4 = pnand %p3393_p3, %p3387_p0 }
  0x90   :  { %v46_v4 = vpop.xlane.xlu0 %45 }
  0x91   :  { %v51_v5 = vmul.f32 0.03125, %v46_v4 }
  0x93   :  { %v53_v6 = vsub.f32 %v41_v0, %v51_v5 }
  0x94   :  { %v49_v7 = vpop.xlane.xlu0 %48 }
  0x95   :  { %v52_v8 = vmul.f32 0.03125, %v49_v7  ;;  %v55_v9 = vmul.f32 %v53_v6, %v53_v6 }
  0x97   :  { %v54_v10 = vsub.f32 %v42_v1, %v52_v8  ;;  %v57_v11 = vsel %vm43_vm0, %v55_v9, 0.0  ;;  %v3573_v1 = vsub.s32 %v235_v60, %v3555_v52 }
  0x98   :  { %58 = vadd.xlane.f32.xlu1 %v57_v11 }
  0x99   :  { %v56_v12 = vmul.f32 %v54_v10, %v54_v10 }
  0x9b   :  { %v60_v13 = vsel %vm43_vm0, %v56_v12, 0.0 }
  0x9c   :  { %61 = vadd.xlane.f32.xlu1 %v60_v13 }
 0x125   :  { %v59_v20 = vpop.xlane.xlu1 %58 }
 0x126   :  { %v63_v21 = vmul.f32 0.03125, %v59_v20 }
 0x128   :  { %v65_v22 = vadd.f32 1e-05, %v63_v21 }
 0x129   :  { %v62_v23 = vpop.xlane.xlu1 %61 }
 0x12a   :  { %3338 = vrsqrt.f32 %v65_v22  ;;  %v64_v24 = vmul.f32 0.03125, %v62_v23 }
 0x12c   :  { %v66_v25 = vadd.f32 1e-05, %v64_v24 }
 0x12e   :  { %3340 = vrsqrt.f32 %v66_v25 }
 0x134   :  { %v3339_v26 = vpop.eup %3338 }
 0x135   :  { %v69_v28 = vmul.f32 %v3339_v26, %v53_v6 }
 0x137   :  { %v77_v30 = vmul.f32 %v2999_v27, %v69_v28 }
 0x138   :  { %v3341_v31 = vpop.eup %3340 }
 0x139   :  { %v85_v32 = vadd.f32 %v3000_v29, %v77_v30  ;;  %v70_v33 = vmul.f32 %v3341_v31, %v54_v10 }
 0x13b   :  { %3127 = vmatprep.mubr.msk.f32.mxu1 %vm43_vm0, %v85_v32  ;;  %v78_v34 = vmul.f32 %v2999_v27, %v70_v33 }
 0x13d   :  { %v86_v35 = vadd.f32 %v3000_v29, %v78_v34 }
 0x13f   :  { %3128 = vmatmul.mubr.msk.f32.vlgmr.msra.gmra.mrb[0].mxu1 %vm43_vm0, %v86_v35 }
 0x140   :  { %3132 = vmatprep.mubr.msk.f32.mxu1 %vm3415_vm1, %v3414_v46 }
 0x212   :  { %v3129_v37 = vpop.f32.mrb[0].mxu1 }
 0x213   :  { %v170_v38 = vpop.f32.mrb[1].mxu1  ;;  %v3522_v40 = vadd.f32 %v3129_v37, %v3001_v36 }
 0x214   :  { %v3518_v39 = vadd.f32 %v3001_v36, %v170_v38 }
 0x216   :  { %187 = vrot.lane.b32.xlu1 %v3518_v39, %s3410_s15  ;;  %181 = vrot.lane.b32.xlu0 %v3518_v39, %s3411_s16 }
 0x21a   :  { %193 = vrot.lane.b32.xlu1 %v3518_v39, %s3412_s17  ;;  %189 = vrot.lane.b32.xlu0 %v3522_v40, %s3410_s15 }
 0x21e   :  { %183 = vrot.lane.b32.xlu1 %v3522_v40, %s3411_s16  ;;  %471 = vrot.lane.b32.xlu0 %v3518_v39, %s3413_s4 }
 0x222   :  { %195 = vrot.lane.b32.xlu1 %v3522_v40, %s3412_s17 }
 0x288   :  { %v3529_v41 = vpop.permute.xlu1 %187  ;;  %v3531_v42 = vpop.permute.xlu0 %181 }
 0x289   :  { %479 = vrot.lane.b32.xlu0 %v3529_v41, %s3413_s4  ;;  %475 = vrot.lane.b32.xlu1 %v3531_v42, %s3413_s4  ;;  %v199_v58 = vcombine.low %v3518_v39, %v3529_v41  ;;  %v200_v59 = vcombine.high %v3518_v39, %v3529_v41 }
 0x28b   :  { %v207_v63 = vrot.slane %v199_v58, %v3562_v57  ;;  %v214_v0 = vrot.slane %v200_v59, %v3562_v57 }
 0x28c   :  { %v3535_v43 = vpop.permute.xlu1 %193  ;;  %v3539_v44 = vpop.permute.xlu0 %189 }
 0x28d   :  { %473 = vrot.lane.b32.xlu0 %v3522_v40, %s3413_s4  ;;  %483 = vrot.lane.b32.xlu1 %v3535_v43, %s3413_s4  ;;  %v215_v55 = vcombine.low %v3531_v42, %v3535_v43  ;;  %v216_v56 = vcombine.high %v3531_v42, %v3535_v43  ;;  %v267_v12 = vcombine.low %v3522_v40, %v3539_v44 }
 0x28e   :  { %v268_v18 = vcombine.high %v3522_v40, %v3539_v44 }
 0x28f   :  { %v223_v61 = vrot.slane %v215_v55, %v3562_v57  ;;  %v230_v62 = vrot.slane %v216_v56, %v3562_v57  ;;  %v275_v21 = vrot.slane %v267_v12, %v3562_v57 }
 0x290   :  { %v3541_v45 = vpop.permute.xlu1 %183  ;;  %v472_v13 = vpop.permute.xlu0 %471  ;;  %v282_v28 = vrot.slane %v268_v18, %v3562_v57 }
 0x291   :  { %481 = vrot.lane.b32.xlu0 %v3539_v44, %s3413_s4  ;;  %477 = vrot.lane.b32.xlu1 %v3541_v45, %s3413_s4  ;;  %v231_v2 = vcombine.low %v207_v63, %v223_v61  ;;  %v232_v3 = vcombine.high %v207_v63, %v223_v61  ;;  %v247_v4 = vcombine.low %v214_v0, %v230_v62 }
 0x292   :  { %v248_v5 = vcombine.high %v214_v0, %v230_v62 }
 0x293   :  { %v239_v6 = vrot.slane %v231_v2, %v3573_v1  ;;  %v246_v7 = vrot.slane %v232_v3, %v3573_v1  ;;  %v255_v8 = vrot.slane %v247_v4, %v3573_v1 }
 0x294   :  { %v3546_v47 = vpop.permute.xlu1 %195  ;;  %v262_v9 = vrot.slane %v248_v5, %v3573_v1 }
 0x295   :  { %485 = vrot.lane.b32.xlu1 %v3546_v47, %s3413_s4  ;;  %v283_v10 = vcombine.low %v3541_v45, %v3546_v47  ;;  %v335_v11 = vcombine.low %v239_v6, %v246_v7  ;;  %v3004_v14 = vcombine.high %v239_v6, %v246_v7  ;;  %v284_v17 = vcombine.high %v3541_v45, %v3546_v47 }
 0x296   :  { %v351_v15 = vcombine.low %v255_v8, %v262_v9  ;;  %v3005_v16 = vcombine.high %v255_v8, %v262_v9 }
 0x297   :  { %v291_v19 = vrot.slane %v283_v10, %v3562_v57  ;;  %v342_v20 = vrot.slane %v335_v11, %v3562_v57  ;;  %v350_v24 = vrot.slane %v3004_v14, %v3562_v57  ;;  %v298_v27 = vrot.slane %v284_v17, %v3562_v57 }
 0x298   :  { %v358_v25 = vrot.slane %v351_v15, %v3562_v57  ;;  %v366_v26 = vrot.slane %v3005_v16, %v3562_v57 }
 0x299   :  { %v299_v29 = vcombine.low %v275_v21, %v291_v19  ;;  %v300_v30 = vcombine.high %v275_v21, %v291_v19  ;;  %v315_v34 = vcombine.low %v282_v28, %v298_v27  ;;  %v316_v35 = vcombine.high %v282_v28, %v298_v27 }
 0x29a   :  { %v367_v37 = vcombine.low %v342_v20, %v350_v24  ;;  %v383_v38 = vcombine.low %v358_v25, %v366_v26  ;;  %v368_v54 = vcombine.high %v342_v20, %v350_v24  ;;  %v384_v55 = vcombine.high %v358_v25, %v366_v26 }
 0x29b   :  { %v307_v51 = vrot.slane %v299_v29, %v3573_v1  ;;  %v314_v53 = vrot.slane %v300_v30, %v3573_v1  ;;  %v323_v61 = vrot.slane %v315_v34, %v3573_v1  ;;  %v330_v62 = vrot.slane %v316_v35, %v3573_v1 }
 0x29c   :  { %v3604_v0 = vrot.slane %v367_v37, %v3573_v1  ;;  %v3607_v2 = vrot.slane %v383_v38, %v3573_v1  ;;  %v3610_v10 = vrot.slane %v368_v54, %v3573_v1  ;;  %v3613_v11 = vrot.slane %v384_v55, %v3573_v1 }
 0x29d   :  { %v403_v8 = vcombine.low %v307_v51, %v314_v53  ;;  %v3006_v9 = vcombine.high %v307_v51, %v314_v53  ;;  %v419_v16 = vcombine.low %v323_v61, %v330_v62  ;;  %v3007_v17 = vcombine.high %v323_v61, %v330_v62 }
 0x29f   :  { %v3620_v25 = vrot.slane %v403_v8, %v3562_v57  ;;  %v3623_v26 = vrot.slane %v3006_v9, %v3562_v57 }
 0x2fb   :  { %v476_v22 = vpop.permute.xlu1 %475  ;;  %v480_v23 = vpop.permute.xlu0 %479 }
 0x2fc   :  { %v495_v31 = vcombine.low %v472_v13, %v480_v23  ;;  %v496_v32 = vcombine.high %v472_v13, %v480_v23 }
 0x2fe   :  { %v503_v56 = vrot.slane %v495_v31, %v3562_v57  ;;  %v510_v58 = vrot.slane %v496_v32, %v3562_v57 }
 0x2ff   :  { %v474_v33 = vpop.permute.xlu0 %473  ;;  %v484_v36 = vpop.permute.xlu1 %483 }
 0x300   :  { %v511_v48 = vcombine.low %v476_v22, %v484_v36  ;;  %v512_v49 = vcombine.high %v476_v22, %v484_v36 }
 0x302   :  { %v519_v59 = vrot.slane %v511_v48, %v3562_v57  ;;  %v526_v60 = vrot.slane %v512_v49, %v3562_v57 }
 0x303   :  { %v478_v63 = vpop.permute.xlu1 %477  ;;  %v482_v7 = vpop.permute.xlu0 %481 }
 0x304   :  { %v527_v3 = vcombine.low %v503_v56, %v519_v59  ;;  %v528_v4 = vcombine.high %v503_v56, %v519_v59  ;;  %v543_v5 = vcombine.low %v510_v58, %v526_v60  ;;  %v544_v6 = vcombine.high %v510_v58, %v526_v60 }
 0x305   :  { %v563_v18 = vcombine.low %v474_v33, %v482_v7  ;;  %v564_v19 = vcombine.high %v474_v33, %v482_v7 }
 0x306   :  { %v535_v12 = vrot.slane %v527_v3, %v3573_v1  ;;  %v542_v13 = vrot.slane %v528_v4, %v3573_v1  ;;  %v551_v14 = vrot.slane %v543_v5, %v3573_v1  ;;  %v558_v15 = vrot.slane %v544_v6, %v3573_v1 }
 0x307   :  { %v486_v20 = vpop.permute.xlu1 %485  ;;  %v571_v33 = vrot.slane %v563_v18, %v3562_v57  ;;  %v578_v34 = vrot.slane %v564_v19, %v3562_v57  ;;  %v426_v4 = vrot.slane %v419_v16, %v3562_v57  ;;  %v434_v5 = vrot.slane %v3007_v17, %v3562_v57 }
 0x308   :  { %v631_v21 = vcombine.low %v535_v12, %v542_v13  ;;  %v3008_v22 = vcombine.high %v535_v12, %v542_v13  ;;  %v647_v23 = vcombine.low %v551_v14, %v558_v15  ;;  %v3009_v24 = vcombine.high %v551_v14, %v558_v15 }
 0x309   :  { %v579_v27 = vcombine.low %v478_v63, %v486_v20  ;;  %v580_v28 = vcombine.high %v478_v63, %v486_v20  ;;  %v399_v14 = vcombine.low %v3604_v0, %v3607_v2  ;;  %v401_v19 = vcombine.low %v3610_v10, %v3613_v11 }
 0x30a   :  { %v638_v29 = vrot.slane %v631_v21, %v3562_v57  ;;  %v646_v30 = vrot.slane %v3008_v22, %v3562_v57  ;;  %v654_v31 = vrot.slane %v647_v23, %v3562_v57  ;;  %v662_v32 = vrot.slane %v3009_v24, %v3562_v57 }
 0x30b   :  { %v587_v35 = vrot.slane %v579_v27, %v3562_v57  ;;  %v594_v36 = vrot.slane %v580_v28, %v3562_v57  ;;  %v435_v21 = vcombine.low %v3620_v25, %v3623_v26  ;;  %v451_v22 = vcombine.low %v426_v4, %v434_v5 }
 0x30c   :  { %v663_v37 = vcombine.low %v638_v29, %v646_v30  ;;  %v679_v38 = vcombine.low %v654_v31, %v662_v32  ;;  %v664_v48 = vcombine.high %v638_v29, %v646_v30  ;;  %v680_v49 = vcombine.high %v654_v31, %v662_v32 }
 0x30d   :  { %v595_v51 = vcombine.low %v571_v33, %v587_v35  ;;  %v596_v53 = vcombine.high %v571_v33, %v587_v35  ;;  %v611_v54 = vcombine.low %v578_v34, %v594_v36  ;;  %v612_v55 = vcombine.high %v578_v34, %v594_v36 }
 0x30e   :  { %v671_v56 = vrot.slane %v663_v37, %v3573_v1  ;;  %v687_v58 = vrot.slane %v679_v38, %v3573_v1  ;;  %v678_v59 = vrot.slane %v664_v48, %v3573_v1  ;;  %v694_v60 = vrot.slane %v680_v49, %v3573_v1 }
 0x30f   :  { %v603_v61 = vrot.slane %v595_v51, %v3573_v1  ;;  %v610_v62 = vrot.slane %v596_v53, %v3573_v1  ;;  %v619_v63 = vrot.slane %v611_v54, %v3573_v1  ;;  %v626_v3 = vrot.slane %v612_v55, %v3573_v1 }
 0x310   :  { %v695_v6 = vcombine.low %v671_v56, %v687_v58  ;;  %v697_v7 = vcombine.low %v678_v59, %v694_v60  ;;  %v696_v20 = vcombine.high %v671_v56, %v687_v58  ;;  %v400_v29 = vcombine.high %v3604_v0, %v3607_v2 }
 0x311   :  { %v699_v8 = vcombine.low %v603_v61, %v610_v62  ;;  %v3010_v9 = vcombine.high %v603_v61, %v610_v62  ;;  %v715_v12 = vcombine.low %v619_v63, %v626_v3  ;;  %v3011_v13 = vcombine.high %v619_v63, %v626_v3 }
 0x312   :  { %3131 = vmatpush3.xpose.msk.msra.mxu1 %vm1069_vm2, %v695_v6  ;;  %3141 = vmatpush3.xpose.msk.msra.mxu0 %vm1069_vm2, %v697_v7  ;;  %v436_v32 = vcombine.high %v3620_v25, %v3623_v26  ;;  %v698_v33 = vcombine.high %v678_v59, %v694_v60  ;;  %v443_v34 = vrot.slane %v435_v21, %v3573_v1  ;;  %v1066_v55 = vand.u32 127, %v204_v50 }
 0x313   :  { %v706_v15 = vrot.slane %v699_v8, %v3562_v57  ;;  %v714_v18 = vrot.slane %v3010_v9, %v3562_v57  ;;  %v722_v16 = vrot.slane %v715_v12, %v3562_v57  ;;  %v730_v17 = vrot.slane %v3011_v13, %v3562_v57  ;;  %3135 = vmatprep.subr.mxu1 %v3414_v46 }
 0x314   :  { %3150 = vmatprep.subr.mxu0 %v3414_v46  ;;  %v459_v0 = vrot.slane %v451_v22, %v3573_v1  ;;  %v452_v2 = vcombine.high %v426_v4, %v434_v5  ;;  %v402_v25 = vcombine.high %v3610_v10, %v3613_v11  ;;  %v450_v48 = vrot.slane %v436_v32, %v3573_v1 }
 0x315   :  { %v731_v23 = vcombine.low %v706_v15, %v714_v18  ;;  %v732_v24 = vcombine.high %v706_v15, %v714_v18  ;;  %v747_v27 = vcombine.low %v722_v16, %v730_v17  ;;  %v748_v28 = vcombine.high %v722_v16, %v730_v17  ;;  %3133 = vmatmul.mubr.msk.f32.vlgmr.msra.gmra.mrb[2].mxu1 %vm1069_vm2, %v399_v14 }
 0x316   :  { %3143 = vmatmul.mubr.msk.f32.vlgmr.msra.gmra.mrb[0].mxu0 %vm1069_vm2, %v401_v19  ;;  %3136 = vmatpush3.xpose.msk.msra.mxu1 %vm1069_vm2, %v696_v20  ;;  %v467_v26 = vcombine.low %v443_v34, %v459_v0  ;;  %v466_v49 = vrot.slane %v452_v2, %v3573_v1  ;;  %v468_v10 = vcombine.high %v443_v34, %v459_v0  ;;  %v3418_v56 = vmov -1e+30  }
 0x317   :  { %3137 = vmatprep.mubr.msk.f32.mxu1 %vm3415_vm1, %v3414_v46  ;;  %3145 = vmatprep.subr.mxu1 %v3414_v46  ;;  %v739_v30 = vrot.slane %v731_v23, %v3573_v1  ;;  %v755_v31 = vrot.slane %v747_v27, %v3573_v1  ;;  %v746_v36 = vrot.slane %v732_v24, %v3573_v1 }
 0x318   :  { %3152 = vmatprep.mubr.msk.f32.mxu0 %vm3415_vm1, %v3414_v46  ;;  %v762_v37 = vrot.slane %v748_v28, %v3573_v1  ;;  %v469_v11 = vcombine.low %v450_v48, %v466_v49  ;;  %v470_v54 = vcombine.high %v450_v48, %v466_v49  ;;  %vm1067_vm3 = vcmp.le.s32.totalorder %v1066_v55, %v3555_v52 }
 0x319   :  { %3138 = vmatmul.mubr.msk.f32.vlgmr.msra.gmra.mrb[4].mxu1 %vm1069_vm2, %v400_v29  ;;  %v763_v35 = vcombine.low %v739_v30, %v755_v31  ;;  %v764_v38 = vcombine.high %v739_v30, %v755_v31  ;;  %v1068_v58 = vsel %vm1067_vm3, 0.0, %v3418_v56 }
 0x31a   :  { %3146 = vmatpush3.xpose.msk.msra.mxu1 %vm1069_vm2, %v698_v33  ;;  %3147 = vmatprep.mubr.msk.f32.mxu1 %vm3415_vm1, %v3414_v46  ;;  %v765_v51 = vcombine.low %v746_v36, %v762_v37  ;;  %v766_v53 = vcombine.high %v746_v36, %v762_v37 }
 0x31b   :  { %3151 = vmatpush3.xpose.msk.msra.mxu0 %vm1069_vm2, %v763_v35  ;;  %3155 = vmatprep.subr.mxu1 %v3414_v46 }
 0x31c   :  { %3160 = vmatprep.subr.mxu0 %v3414_v46 }
 0x31d   :  { %3148 = vmatmul.mubr.msk.f32.vlgmr.msra.gmra.mrb[6].mxu1 %vm1069_vm2, %v402_v25 }
 0x31e   :  { %3153 = vmatmul.mubr.msk.f32.vlgmr.msra.gmra.mrb[2].mxu0 %vm1069_vm2, %v467_v26  ;;  %3156 = vmatpush3.xpose.msk.msra.mxu1 %vm1069_vm2, %v764_v38 }
 0x31f   :  { %3161 = vmatpush3.xpose.msk.msra.mxu0 %vm1069_vm2, %v765_v51  ;;  %3157 = vmatprep.mubr.msk.f32.mxu1 %vm3415_vm1, %v3414_v46 }
 0x320   :  { %3162 = vmatprep.mubr.msk.f32.mxu0 %vm3415_vm1, %v3414_v46  ;;  %3165 = vmatprep.subr.mxu1 %v3414_v46 }
 0x321   :  { %3158 = vmatmul.mubr.msk.f32.vlgmr.msra.gmra.mrb[8].mxu1 %vm1069_vm2, %v468_v10  ;;  %3170 = vmatprep.subr.mxu0 %v3414_v46 }
 0x322   :  { %3163 = vmatmul.mubr.msk.f32.vlgmr.msra.gmra.mrb[4].mxu0 %vm1069_vm2, %v469_v11  ;;  %3166 = vmatpush3.xpose.msk.msra.mxu1 %vm1069_vm2, %v766_v53 }
 0x323   :  { %3167 = vmatprep.mubr.msk.f32.mxu1 %vm3415_vm1, %v3414_v46  ;;  %3175 = vmatprep.subr.mxu1 %v3414_v46 }
 0x324   :  { %3172 = vmatprep.mubr.msk.f32.mxu0 %vm3415_vm1, %v3414_v46 }
 0x325   :  { %3168 = vmatmul.mubr.msk.f32.vlgmr.msra.gmra.mrb[10].mxu1 %vm1069_vm2, %v470_v54 }
 0x326   :  { %3177 = vmatprep.mubr.msk.f32.mxu1 %vm3415_vm1, %v3414_v46 }
 0x3e8   :  { %v1142_v59 = vpop.f32.mrb[2].mxu1 }
 0x3e9   :  { %v1143_v60 = vadd.f32 %v1142_v59, %v1068_v58  ;;  %v1294_v61 = vpop.f32.mrb[0].mxu0  ;;  %v3134_v62 = vpop.f32.mrb[3].mxu1 }
 0x3ea   :  { %v3144_v63 = vpop.f32.mrb[1].mxu0  ;;  %v1295_v3 = vadd.f32 %v1294_v61, %v1068_v58 }
 0x3eb   :  { %v1678_v4 = vsel %vm1069_vm2, %v1143_v60, -inf }
 0x3ec   :  { %1679 = vmax.xlane.f32.xlu0 %v1678_v4  ;;  %v1218_v5 = vpop.f32.mrb[4].mxu1  ;;  %v1684_v8 = vsel %vm1069_vm2, %v1295_v3, -inf }
 0x3ed   :  { %v1219_v6 = vadd.f32 %v1218_v5, %v1068_v58  ;;  %v3139_v7 = vpop.f32.mrb[5].mxu1 }
 0x3ef   :  { %v1681_v50 = vsel %vm1069_vm2, %v1219_v6, -inf }
 0x3f0   :  { %1685 = vmax.xlane.f32.xlu0 %v1684_v8  ;;  %1682 = vmax.xlane.f32.xlu1 %v1681_v50  ;;  %v1370_v52 = vpop.f32.mrb[6].mxu1 }
 0x3f1   :  { %v1446_v9 = vpop.f32.mrb[2].mxu0  ;;  %v3149_v12 = vpop.f32.mrb[7].mxu1  ;;  %v1371_v15 = vadd.f32 %v1370_v52, %v1068_v58 }
 0x3f2   :  { %v1447_v13 = vadd.f32 %v1446_v9, %v1068_v58  ;;  %v3154_v14 = vpop.f32.mrb[3].mxu0 }
 0x3f3   :  { %v1687_v23 = vsel %vm1069_vm2, %v1371_v15, -inf }
 0x3f4   :  { %v1522_v18 = vpop.f32.mrb[8].mxu1  ;;  %v1690_v16 = vsel %vm1069_vm2, %v1447_v13, -inf }
 0x3f5   :  { %1691 = vmax.xlane.f32.xlu0 %v1690_v16  ;;  %v1598_v17 = vpop.f32.mrb[4].mxu0  ;;  %v3159_v19 = vpop.f32.mrb[9].mxu1  ;;  %v1523_v29 = vadd.f32 %v1522_v18, %v1068_v58 }
 0x3f6   :  { %v3164_v20 = vpop.f32.mrb[5].mxu0  ;;  %v1599_v21 = vadd.f32 %v1598_v17, %v1068_v58 }
 0x3f7   :  { %v1693_v30 = vsel %vm1069_vm2, %v1523_v29, -inf }
 0x3f8   :  { %v1674_v22 = vpop.f32.mrb[10].mxu1  ;;  %v1696_v28 = vsel %vm1069_vm2, %v1599_v21, -inf }
 0x3f9   :  { %v3714_v24 = vadd.f32 %v1674_v22, %v1068_v58  ;;  %1688 = vmax.xlane.f32.xlu0 %v1687_v23  ;;  %v3169_v27 = vpop.f32.mrb[11].mxu1 }
 0x3fb   :  { %v1699_v31 = vsel %vm1069_vm2, %v3714_v24, -inf }
 0x3fd   :  { %1697 = vmax.xlane.f32.xlu0 %v1696_v28 }
 0x401   :  { %771 = vrot.lane.b32.xlu1 %v3531_v42, %s3419_s18 }
 0x405   :  { %775 = vrot.lane.b32.xlu1 %v3529_v41, %s3419_s18 }
 0x413   :  { %767 = vrot.lane.b32.xlu0 %v3518_v39, %s3419_s18 }
 0x429   :  { %1694 = vmax.xlane.f32.xlu1 %v1693_v30 }
 0x42d   :  { %1700 = vmax.xlane.f32.xlu1 %v1699_v31 }
 0x43e   :  { %779 = vrot.lane.b32.xlu1 %v3535_v43, %s3419_s18 }
 0x479   :  { %v1680_v32 = vpop.xlane.xlu0 %1679 }
 0x47a   :  { %v1702_v33 = vsub.f32 %v1143_v60, %v1680_v32 }
 0x47c   :  { %v1710_v42 = vmul.f32 1.442695, %v1702_v33 }
 0x47d   :  { %v1683_v34 = vpop.xlane.xlu1 %1682  ;;  %v1686_v0 = vpop.xlane.xlu0 %1685 }
 0x47e   :  { %3342 = vpow2.f32 %v1710_v42  ;;  %v1703_v41 = vsub.f32 %v1219_v6, %v1683_v34  ;;  %v1704_v2 = vsub.f32 %v1295_v3, %v1686_v0 }
 0x480   :  { %v1712_v39 = vmul.f32 1.442695, %v1703_v41  ;;  %v1714_v35 = vmul.f32 1.442695, %v1704_v2 }
 0x481   :  { %v772_v3 = vpop.permute.xlu1 %771 }
 0x482   :  { %3344 = vpow2.f32 %v1712_v39  ;;  %v1692_v36 = vpop.xlane.xlu0 %1691 }
 0x483   :  { %3346 = vpow2.f32 %v1714_v35  ;;  %v1706_v37 = vsub.f32 %v1447_v13, %v1692_v36 }
 0x485   :  { %v1718_v25 = vmul.f32 1.442695, %v1706_v37  ;;  %v776_v4 = vpop.permute.xlu1 %775 }
 0x486   :  { %v1689_v26 = vpop.xlane.xlu0 %1688 }
 0x487   :  { %3348 = vpow2.f32 %v1718_v25  ;;  %v1705_v38 = vsub.f32 %v1371_v15, %v1689_v26 }
 0x488   :  { %v3728_v48 = vpop.eup %3342 }
 0x489   :  { %v1716_v43 = vmul.f32 1.442695, %v1705_v38  ;;  %v1726_v49 = vsel %vm1069_vm2, %v3728_v48, 0.0 }
 0x48a   :  { %v1698_v51 = vpop.xlane.xlu0 %1697  ;;  %1727 = vadd.xlane.f32.xlu0 %v1726_v49 }
 0x48b   :  { %3350 = vpow2.f32 %v1716_v43  ;;  %v1708_v10 = vsub.f32 %v1599_v21, %v1698_v51 }
 0x48c   :  { %v3732_v11 = vpop.eup %3344 }
 0x48d   :  { %v3734_v53 = vpop.eup %3346  ;;  %v1722_v54 = vmul.f32 1.442695, %v1708_v10  ;;  %v1729_v55 = vsel %vm1069_vm2, %v3732_v11, 0.0 }
 0x48e   :  { %1730 = vadd.xlane.f32.xlu1 %v1729_v55  ;;  %v1732_v56 = vsel %vm1069_vm2, %v3734_v53, 0.0  ;;  %v768_v8 = vpop.permute.xlu0 %767 }
 0x48f   :  { %3352 = vpow2.f32 %v1722_v54  ;;  %1733 = vadd.xlane.f32.xlu0 %v1732_v56  ;;  %v791_v9 = vcombine.low %v768_v8, %v776_v4  ;;  %v792_v12 = vcombine.high %v768_v8, %v776_v4 }
 0x491   :  { %v3740_v58 = vpop.eup %3348  ;;  %v799_v16 = vrot.slane %v791_v9, %v3562_v57  ;;  %v806_v17 = vrot.slane %v792_v12, %v3562_v57 }
 0x492   :  { %v1738_v59 = vsel %vm1069_vm2, %v3740_v58, 0.0 }
 0x493   :  { %1739 = vadd.xlane.f32.xlu0 %v1738_v59 }
 0x495   :  { %v3744_v60 = vpop.eup %3350 }
 0x496   :  { %v1735_v61 = vsel %vm1069_vm2, %v3744_v60, 0.0 }
 0x497   :  { %1736 = vadd.xlane.f32.xlu1 %v1735_v61 }
 0x499   :  { %v3748_v62 = vpop.eup %3352 }
 0x49a   :  { %v1744_v63 = vsel %vm1069_vm2, %v3748_v62, 0.0 }
 0x49b   :  { %1745 = vadd.xlane.f32.xlu0 %v1744_v63 }
 0x4b6   :  { %v1695_v5 = vpop.xlane.xlu1 %1694 }
 0x4b7   :  { %v1707_v6 = vsub.f32 %v1523_v29, %v1695_v5 }
 0x4b9   :  { %v1720_v7 = vmul.f32 1.442695, %v1707_v6 }
 0x4ba   :  { %v1701_v50 = vpop.xlane.xlu1 %1700 }
 0x4bb   :  { %3354 = vpow2.f32 %v1720_v7  ;;  %v1709_v52 = vsub.f32 %v3714_v24, %v1701_v50 }
 0x4bd   :  { %v1724_v13 = vmul.f32 1.442695, %v1709_v52 }
 0x4be   :  { %v780_v14 = vpop.permute.xlu1 %779 }
 0x4bf   :  { %3356 = vpow2.f32 %v1724_v13  ;;  %v807_v15 = vcombine.low %v772_v3, %v780_v14  ;;  %v808_v18 = vcombine.high %v772_v3, %v780_v14 }
 0x4c1   :  { %v815_v19 = vrot.slane %v807_v15, %v3562_v57  ;;  %v822_v20 = vrot.slane %v808_v18, %v3562_v57 }
 0x4c3   :  { %v823_v21 = vcombine.low %v799_v16, %v815_v19  ;;  %v824_v22 = vcombine.high %v799_v16, %v815_v19  ;;  %v839_v23 = vcombine.low %v806_v17, %v822_v20  ;;  %v840_v27 = vcombine.high %v806_v17, %v822_v20 }
 0x4c5   :  { %v3757_v24 = vpop.eup %3354  ;;  %v831_v28 = vrot.slane %v823_v21, %v3573_v1  ;;  %v838_v29 = vrot.slane %v824_v22, %v3573_v1  ;;  %v847_v30 = vrot.slane %v839_v23, %v3573_v1  ;;  %v854_v31 = vrot.slane %v840_v27, %v3573_v1 }
 0x4c6   :  { %v1741_v32 = vsel %vm1069_vm2, %v3757_v24, 0.0 }
 0x4c7   :  { %v927_v33 = vcombine.low %v831_v28, %v838_v29  ;;  %v3012_v42 = vcombine.high %v831_v28, %v838_v29  ;;  %v943_v34 = vcombine.low %v847_v30, %v854_v31  ;;  %v3013_v0 = vcombine.high %v847_v30, %v854_v31  ;;  %1742 = vadd.xlane.f32.xlu1 %v1741_v32 }
 0x4c9   :  { %v3765_v41 = vpop.eup %3356  ;;  %v934_v2 = vrot.slane %v927_v33, %v3562_v57  ;;  %v942_v39 = vrot.slane %v3012_v42, %v3562_v57  ;;  %v950_v35 = vrot.slane %v943_v34, %v3562_v57  ;;  %v958_v36 = vrot.slane %v3013_v0, %v3562_v57 }
 0x4ca   :  { %v1747_v37 = vsel %vm1069_vm2, %v3765_v41, 0.0 }
 0x4cb   :  { %1748 = vadd.xlane.f32.xlu0 %v1747_v37  ;;  %v959_v25 = vcombine.low %v934_v2, %v942_v39  ;;  %v975_v26 = vcombine.low %v950_v35, %v958_v36  ;;  %v960_v38 = vcombine.high %v934_v2, %v942_v39  ;;  %v976_v43 = vcombine.high %v950_v35, %v958_v36 }
 0x4cd   :  { %v967_v49 = vrot.slane %v959_v25, %v3573_v1  ;;  %v983_v51 = vrot.slane %v975_v26, %v3573_v1  ;;  %v974_v10 = vrot.slane %v960_v38, %v3573_v1  ;;  %v990_v54 = vrot.slane %v976_v43, %v3573_v1 }
 0x4cf   :  { %v991_v55 = vcombine.low %v967_v49, %v983_v51  ;;  %v992_v56 = vcombine.high %v967_v49, %v983_v51  ;;  %v993_v59 = vcombine.low %v974_v10, %v990_v54  ;;  %v994_v61 = vcombine.high %v974_v10, %v990_v54 }
 0x4d1   :  { %3171 = vmatpush3.msra.mxu0 %v991_v55  ;;  %3176 = vmatpush3.msra.mxu1 %v992_v56 }
 0x4d2   :  { %3180 = vmatprep.subr.mxu0 %v3414_v46  ;;  %3185 = vmatprep.subr.mxu1 %v3414_v46 }
 0x4d8   :  { %773 = vrot.lane.b32.xlu1 %v3541_v45, %s3419_s18 }
 0x4dc   :  { %777 = vrot.lane.b32.xlu1 %v3539_v44, %s3419_s18 }
 0x4e0   :  { %781 = vrot.lane.b32.xlu1 %v3546_v47, %s3419_s18 }
 0x4e1   :  { %769 = vrot.lane.b32.xlu0 %v3522_v40, %s3419_s18 }
 0x517   :  { %v1728_v63 = vpop.xlane.xlu0 %1727 }
 0x518   :  { %3358 = vrcp.f32 %v1728_v63 }
 0x51b   :  { %v1731_v3 = vpop.xlane.xlu1 %1730 }
 0x51c   :  { %3360 = vrcp.f32 %v1731_v3  ;;  %v1734_v4 = vpop.xlane.xlu0 %1733 }
 0x51d   :  { %3362 = vrcp.f32 %v1734_v4 }
 0x522   :  { %v3359_v5 = vpop.eup %3358 }
 0x523   :  { %v1751_v6 = vmul.f32 %v3359_v5, %v3728_v48 }
 0x524   :  { %v1737_v7 = vpop.xlane.xlu1 %1736 }
 0x525   :  { %3364 = vrcp.f32 %v1737_v7  ;;  %3173 = vmatmul.mubr.msk.f32.vlgmr.msra.gmra.mrb[6].mxu0 %vm1069_vm2, %v1751_v6 }
 0x526   :  { %v3361_v44 = vpop.eup %3360  ;;  %3181 = vmatpush3.msra.mxu0 %v993_v59  ;;  %3182 = vmatprep.mubr.msk.f32.mxu0 %vm3415_vm1, %v3414_v46 }
 0x527   :  { %v3363_v45 = vpop.eup %3362  ;;  %v1753_v40 = vmul.f32 %v3361_v44, %v3732_v11  ;;  %3190 = vmatprep.subr.mxu0 %v3414_v46 }
 0x528   :  { %v1755_v47 = vmul.f32 %v3363_v45, %v3734_v53  ;;  %v1740_v53 = vpop.xlane.xlu0 %1739 }
 0x529   :  { %3178 = vmatmul.mubr.msk.f32.vlgmr.msra.gmra.mrb[12].mxu1 %vm1069_vm2, %v1753_v40  ;;  %3366 = vrcp.f32 %v1740_v53 }
 0x52a   :  { %3183 = vmatmul.mubr.msk.f32.vlgmr.msra.gmra.mrb[8].mxu0 %vm1069_vm2, %v1755_v47  ;;  %3186 = vmatpush3.msra.mxu1 %v994_v61 }
 0x52b   :  { %3187 = vmatprep.mubr.msk.f32.mxu1 %vm3415_vm1, %v3414_v46  ;;  %3195 = vmatprep.subr.mxu1 %v3414_v46 }
 0x52c   :  { %3192 = vmatprep.mubr.msk.f32.mxu0 %vm3415_vm1, %v3414_v46  ;;  %v1746_v8 = vpop.xlane.xlu0 %1745 }
 0x52f   :  { %v3365_v48 = vpop.eup %3364 }
 0x530   :  { %v1757_v11 = vmul.f32 %v3365_v48, %v3744_v60 }
 0x532   :  { %3188 = vmatmul.mubr.msk.f32.vlgmr.msra.gmra.mrb[14].mxu1 %vm1069_vm2, %v1757_v11 }
 0x533   :  { %3197 = vmatprep.mubr.msk.f32.mxu1 %vm3415_vm1, %v3414_v46  ;;  %v3367_v37 = vpop.eup %3366 }
 0x534   :  { %v1759_v3 = vmul.f32 %v3367_v37, %v3740_v58 }
 0x554   :  { %v1743_v50 = vpop.xlane.xlu1 %1742 }
 0x555   :  { %3368 = vrcp.f32 %v1743_v50 }
 0x556   :  { %3370 = vrcp.f32 %v1746_v8 }
 0x558   :  { %v774_v52 = vpop.permute.xlu1 %773  ;;  %v1749_v9 = vpop.xlane.xlu0 %1748 }
 0x559   :  { %3372 = vrcp.f32 %v1749_v9 }
 0x55c   :  { %v778_v12 = vpop.permute.xlu1 %777  ;;  %v770_v13 = vpop.permute.xlu0 %769 }
 0x55d   :  { %v859_v14 = vcombine.low %v770_v13, %v778_v12  ;;  %v860_v15 = vcombine.high %v770_v13, %v778_v12 }
 0x55f   :  { %v867_v60 = vrot.slane %v859_v14, %v3562_v57  ;;  %v874_v19 = vrot.slane %v860_v15, %v3562_v57  ;;  %v3369_v49 = vpop.eup %3368 }
 0x560   :  { %v782_v18 = vpop.permute.xlu1 %781  ;;  %v3371_v54 = vpop.eup %3370  ;;  %v1761_v4 = vmul.f32 %v3369_v49, %v3757_v24 }
 0x561   :  { %v875_v16 = vcombine.low %v774_v52, %v782_v18  ;;  %v876_v17 = vcombine.high %v774_v52, %v782_v18  ;;  %v1763_v7 = vmul.f32 %v3371_v54, %v3748_v62 }
 0x563   :  { %v883_v20 = vrot.slane %v875_v16, %v3562_v57  ;;  %v890_v21 = vrot.slane %v876_v17, %v3562_v57  ;;  %v3373_v63 = vpop.eup %3372 }
 0x564   :  { %v1765_v44 = vmul.f32 %v3373_v63, %v3765_v41 }
 0x565   :  { %v891_v22 = vcombine.low %v867_v60, %v883_v20  ;;  %v892_v23 = vcombine.high %v867_v60, %v883_v20  ;;  %v907_v27 = vcombine.low %v874_v19, %v890_v21  ;;  %v908_v28 = vcombine.high %v874_v19, %v890_v21 }
 0x567   :  { %v899_v29 = vrot.slane %v891_v22, %v3573_v1  ;;  %v906_v30 = vrot.slane %v892_v23, %v3573_v1  ;;  %v915_v31 = vrot.slane %v907_v27, %v3573_v1  ;;  %v922_v32 = vrot.slane %v908_v28, %v3573_v1 }
 0x569   :  { %v995_v33 = vcombine.low %v899_v29, %v906_v30  ;;  %v3014_v42 = vcombine.high %v899_v29, %v906_v30  ;;  %v1011_v34 = vcombine.low %v915_v31, %v922_v32  ;;  %v3015_v0 = vcombine.high %v915_v31, %v922_v32 }
 0x56b   :  { %v1002_v2 = vrot.slane %v995_v33, %v3562_v57  ;;  %v1010_v39 = vrot.slane %v3014_v42, %v3562_v57  ;;  %v1018_v35 = vrot.slane %v1011_v34, %v3562_v57  ;;  %v1026_v36 = vrot.slane %v3015_v0, %v3562_v57 }
 0x56d   :  { %v1027_v25 = vcombine.low %v1002_v2, %v1010_v39  ;;  %v1043_v26 = vcombine.low %v1018_v35, %v1026_v36  ;;  %v1028_v38 = vcombine.high %v1002_v2, %v1010_v39  ;;  %v1044_v43 = vcombine.high %v1018_v35, %v1026_v36 }
 0x56f   :  { %v1035_v51 = vrot.slane %v1027_v25, %v3573_v1  ;;  %v1051_v10 = vrot.slane %v1043_v26, %v3573_v1  ;;  %v1042_v55 = vrot.slane %v1028_v38, %v3573_v1  ;;  %v1058_v56 = vrot.slane %v1044_v43, %v3573_v1 }
 0x571   :  { %v1059_v59 = vcombine.low %v1035_v51, %v1051_v10  ;;  %v1060_v61 = vcombine.high %v1035_v51, %v1051_v10  ;;  %v1061_v5 = vcombine.low %v1042_v55, %v1058_v56  ;;  %v1062_v6 = vcombine.high %v1042_v55, %v1058_v56 }
 0x573   :  { %3191 = vmatpush3.msra.mxu0 %v1059_v59  ;;  %3196 = vmatpush3.msra.mxu1 %v1060_v61 }
 0x574   :  { %3193 = vmatmul.mubr.msk.f32.vlgmr.msra.gmra.mrb[10].mxu0 %vm1069_vm2, %v1759_v3  ;;  %3198 = vmatmul.mubr.msk.f32.vlgmr.msra.gmra.mrb[16].mxu1 %vm1069_vm2, %v1761_v4 }
 0x575   :  { %3200 = vmatprep.subr.mxu0 %v3414_v46  ;;  %3205 = vmatprep.subr.mxu1 %v3414_v46 }
 0x576   :  { %3201 = vmatpush3.msra.mxu0 %v1061_v5  ;;  %3206 = vmatpush3.msra.mxu1 %v1062_v6 }
 0x577   :  { %3202 = vmatprep.mubr.msk.f32.mxu0 %vm3415_vm1, %v3414_v46  ;;  %3207 = vmatprep.mubr.msk.f32.mxu1 %vm3415_vm1, %v3414_v46 }
 0x578   :  { %3203 = vmatmul.mubr.msk.f32.vlgmr.msra.gmra.mrb[12].mxu0 %vm1069_vm2, %v1763_v7  ;;  %3208 = vmatmul.mubr.msk.f32.vlgmr.msra.gmra.mrb[18].mxu1 %vm1069_vm2, %v1765_v44 }
 0x5f8   :  { %v1835_v58 = vpop.f32.mrb[6].mxu0 }
 0x5f9   :  { %v3174_v24 = vpop.f32.mrb[7].mxu0 }
 0x5fc   :  { %v1908_v45 = vpop.f32.mrb[12].mxu1 }
 0x5fd   :  { %v1981_v40 = vpop.f32.mrb[8].mxu0  ;;  %v3179_v47 = vpop.f32.mrb[13].mxu1 }
 0x5fe   :  { %v2350_v62 = vcombine.low %v1835_v58, %v1981_v40  ;;  %v2351_v48 = vcombine.high %v1835_v58, %v1981_v40  ;;  %v3184_v41 = vpop.f32.mrb[9].mxu0  ;;  %v2655_v40 = vld [vmem:[%s4017_s5 + $0x8] sm:$0xff] }
 0x600   :  { %v2358_v52 = vrot.slane %v2350_v62, %v3562_v57  ;;  %v2365_v46 = vrot.slane %v2351_v48, %v3562_v57 }
 0x605   :  { %v2054_v11 = vpop.f32.mrb[14].mxu1 }
 0x606   :  { %v2366_v53 = vcombine.low %v1908_v45, %v2054_v11  ;;  %v2367_v8 = vcombine.high %v1908_v45, %v2054_v11  ;;  %v3189_v50 = vpop.f32.mrb[15].mxu1  ;;  %v2654_v45 = vld [vmem:[%s4017_s5] sm:$0xff] }
 0x607   :  { %v3275_v11 = vpack.c.bf16 %v2655_v40, %v2654_v45  ;;  %v2779_v45 = vld [vmem:[%s4019_s7 + $0x8] sm:$0xff] }
 0x608   :  { %v2374_v9 = vrot.slane %v2366_v53, %v3562_v57  ;;  %v2381_v12 = vrot.slane %v2367_v8, %v3562_v57 }
 0x609   :  { %3276 = vmatprep.subr.bf16.mxu1 %v3275_v11 }
 0x60a   :  { %v2382_v13 = vcombine.low %v2358_v52, %v2374_v9  ;;  %v2383_v14 = vcombine.high %v2358_v52, %v2374_v9  ;;  %v2398_v15 = vcombine.low %v2365_v46, %v2381_v12  ;;  %v2399_v18 = vcombine.high %v2365_v46, %v2381_v12  ;;  %v2656_v46 = vld [vmem:[%s4017_s5 + $0x10] sm:$0xff]  ;;  %v2657_v9 = vld [vmem:[%s4017_s5 + $0x18] sm:$0xff]  ;;  %3278 = vmatpush3.bf16.msra.mxu1 %v3275_v11  ;;  %v2882_v11 = vld [vmem:[%s4021_s9 + $0x8] sm:$0xff] }
 0x60c   :  { %v2390_v16 = vrot.slane %v2382_v13, %v3573_v1  ;;  %v2397_v17 = vrot.slane %v2383_v14, %v3573_v1  ;;  %v2406_v60 = vrot.slane %v2398_v15, %v3573_v1  ;;  %v2413_v19 = vrot.slane %v2399_v18, %v3573_v1 }
 0x60d   :  { %v3279_v18 = vpack.c.bf16 %v2657_v9, %v2656_v46  ;;  %v2885_v46 = vld [vmem:[%s4021_s9 + $0x20] sm:$0xff]  ;;  %v2886_v9 = vld [vmem:[%s4021_s9 + $0x28] sm:$0xff] }
 0x60e   :  { %v2486_v20 = vcombine.low %v2390_v16, %v2397_v17  ;;  %v3040_v21 = vcombine.high %v2390_v16, %v2397_v17  ;;  %v2502_v22 = vcombine.low %v2406_v60, %v2413_v19  ;;  %v3041_v23 = vcombine.high %v2406_v60, %v2413_v19 }
 0x60f   :  { %3280 = vmatprep.subr.bf16.mxu1 %v3279_v18 }
 0x610   :  { %v2493_v27 = vrot.slane %v2486_v20, %v3562_v57  ;;  %v2501_v28 = vrot.slane %v3040_v21, %v3562_v57  ;;  %v2509_v29 = vrot.slane %v2502_v22, %v3562_v57  ;;  %v2517_v30 = vrot.slane %v3041_v23, %v3562_v57  ;;  %3282 = vmatpush3.bf16.msra.mxu1 %v3279_v18 }
 0x612   :  { %v2518_v31 = vcombine.low %v2493_v27, %v2501_v28  ;;  %v2534_v32 = vcombine.low %v2509_v29, %v2517_v30  ;;  %v2519_v33 = vcombine.high %v2493_v27, %v2501_v28  ;;  %v2535_v42 = vcombine.high %v2509_v29, %v2517_v30 }
 0x614   :  { %v3848_v34 = vrot.slane %v2518_v31, %v3573_v1  ;;  %v3851_v0 = vrot.slane %v2534_v32, %v3573_v1  ;;  %v2533_v2 = vrot.slane %v2519_v33, %v3573_v1  ;;  %v2549_v39 = vrot.slane %v2535_v42, %v3573_v1 }
 0x616   :  { %v2551_v35 = vcombine.high %v3848_v34, %v3851_v0  ;;  %v2552_v36 = vcombine.low %v2533_v2, %v2549_v39  ;;  %v2553_v37 = vcombine.high %v2533_v2, %v2549_v39  ;;  %v2550_v25 = vcombine.low %v3848_v34, %v3851_v0  ;;  %v3044_v34 = vld [vmem:[%s4018_s6] ss:$0 sm:$0xff] }
 0x618   :  { %2624 = vrot.lane.b32.xlu0 %v2551_v35, %s3420_s19 }
 0x61c   :  { %2632 = vrot.lane.b32.xlu0 %v2552_v36, %s3421_s20 }
 0x620   :  { %2640 = vrot.lane.b32.xlu0 %v2553_v37, %s3422_s21 }
 0x647   :  { %v2127_v26 = vpop.f32.mrb[10].mxu0  ;;  %v2200_v38 = vpop.f32.mrb[16].mxu1 }
 0x648   :  { %v3194_v43 = vpop.f32.mrb[11].mxu0  ;;  %v3199_v49 = vpop.f32.mrb[17].mxu1 }
 0x649   :  { %v3382_v49 = vld [vmem:[%s4012_s0 + $0x8] sm:$0xff] }
 0x64b   :  { %v2273_v51 = vpop.f32.mrb[12].mxu0  ;;  %v2346_v10 = vpop.f32.mrb[18].mxu1 }
 0x64c   :  { %v2418_v54 = vcombine.low %v2127_v26, %v2273_v51  ;;  %v2419_v55 = vcombine.high %v2127_v26, %v2273_v51  ;;  %v2434_v56 = vcombine.low %v2200_v38, %v2346_v10  ;;  %v2435_v59 = vcombine.high %v2200_v38, %v2346_v10  ;;  %v3204_v61 = vpop.f32.mrb[13].mxu0  ;;  %v3209_v63 = vpop.f32.mrb[19].mxu1  ;;  %v3383_v10 = vld [vmem:[%s4012_s0] sm:$0xff] }
 0x64e   :  { %v2426_v3 = vrot.slane %v2418_v54, %v3562_v57  ;;  %v2433_v4 = vrot.slane %v2419_v55, %v3562_v57  ;;  %v2442_v5 = vrot.slane %v2434_v56, %v3562_v57  ;;  %v2449_v6 = vrot.slane %v2435_v59, %v3562_v57 }
 0x650   :  { %v2450_v7 = vcombine.low %v2426_v3, %v2442_v5  ;;  %v2451_v44 = vcombine.high %v2426_v3, %v2442_v5  ;;  %v2466_v58 = vcombine.low %v2433_v4, %v2449_v6  ;;  %v2467_v24 = vcombine.high %v2433_v4, %v2449_v6 }
 0x652   :  { %v2458_v47 = vrot.slane %v2450_v7, %v3573_v1  ;;  %v2465_v62 = vrot.slane %v2451_v44, %v3573_v1  ;;  %v2474_v48 = vrot.slane %v2466_v58, %v3573_v1  ;;  %v2481_v41 = vrot.slane %v2467_v24, %v3573_v1  ;;  %v2778_v24 = vld [vmem:[%s4019_s7] sm:$0xff] }
 0x653   :  { %v3283_v40 = vpack.c.bf16 %v2779_v45, %v2778_v24 }
 0x654   :  { %v2554_v53 = vcombine.low %v2458_v47, %v2465_v62  ;;  %v3042_v8 = vcombine.high %v2458_v47, %v2465_v62  ;;  %v2570_v50 = vcombine.low %v2474_v48, %v2481_v41  ;;  %v3043_v52 = vcombine.high %v2474_v48, %v2481_v41  ;;  %v2780_v47 = vld [vmem:[%s4019_s7 + $0x10] sm:$0xff]  ;;  %v2781_v62 = vld [vmem:[%s4019_s7 + $0x18] sm:$0xff]  ;;  %v2881_v41 = vld [vmem:[%s4021_s9] sm:$0xff] }
 0x655   :  { %3284 = vmatprep.subr.bf16.mxu1 %v3283_v40  ;;  %v3287_v48 = vpack.c.bf16 %v2781_v62, %v2780_v47 }
 0x656   :  { %v2561_v12 = vrot.slane %v2554_v53, %v3562_v57  ;;  %v2569_v13 = vrot.slane %v3042_v8, %v3562_v57  ;;  %v2577_v14 = vrot.slane %v2570_v50, %v3562_v57  ;;  %v2585_v15 = vrot.slane %v3043_v52, %v3562_v57  ;;  %v2883_v53 = vld [vmem:[%s4021_s9 + $0x10] sm:$0xff]  ;;  %v2884_v50 = vld [vmem:[%s4021_s9 + $0x18] sm:$0xff] }
 0x657   :  { %v3291_v8 = vpack.c.bf16 %v2882_v11, %v2881_v41  ;;  %v3295_v52 = vpack.c.bf16 %v2884_v50, %v2883_v53 }
 0x658   :  { %v2586_v16 = vcombine.low %v2561_v12, %v2569_v13  ;;  %v2602_v17 = vcombine.low %v2577_v14, %v2585_v15  ;;  %v2587_v60 = vcombine.high %v2561_v12, %v2569_v13  ;;  %v2603_v19 = vcombine.high %v2577_v14, %v2585_v15 }
 0x659   :  { %3292 = vmatprep.subr.bf16.mxu0 %v3291_v8  ;;  %v3299_v12 = vpack.c.bf16 %v2886_v9, %v2885_v46 }
 0x65a   :  { %v2594_v20 = vrot.slane %v2586_v16, %v3573_v1  ;;  %v2610_v21 = vrot.slane %v2602_v17, %v3573_v1  ;;  %v2601_v22 = vrot.slane %v2587_v60, %v3573_v1  ;;  %v2617_v23 = vrot.slane %v2603_v19, %v3573_v1  ;;  %3294 = vmatpush3.bf16.msra.mxu0 %v3291_v8 }
 0x65b   :  { %3296 = vmatprep.subr.bf16.mxu0 %v3295_v52 }
 0x65c   :  { %v2619_v27 = vcombine.high %v2594_v20, %v2610_v21  ;;  %v2620_v28 = vcombine.low %v2601_v22, %v2617_v23  ;;  %v2621_v29 = vcombine.high %v2601_v22, %v2617_v23  ;;  %v2618_v57 = vcombine.low %v2594_v20, %v2610_v21  ;;  %v3384_v20 = vld [vmem:[%s4013_s1] ss:$0 sm:$0xff] }
 0x65e   :  { %2626 = vrot.lane.b32.xlu1 %v2619_v27, %s3420_s19  ;;  %3298 = vmatpush3.bf16.msra.mxu0 %v3295_v52  ;;  %v3385_v27 = vld [vmem:[%s4014_s2] ss:$0 sm:$0xff] }
 0x65f   :  { %3300 = vmatprep.subr.bf16.mxu0 %v3299_v12 }
 0x662   :  { %2634 = vrot.lane.b32.xlu1 %v2620_v28, %s3421_s20  ;;  %3302 = vmatpush3.bf16.msra.mxu0 %v3299_v12 }
 0x666   :  { %2642 = vrot.lane.b32.xlu1 %v2621_v29, %s3422_s21 }
 0x68a   :  { %v2625_v30 = vpop.permute.xlu0 %2624 }
 0x68b   :  { %v2646_v1 = vsel %vm1069_vm2, %v2550_v25, %v2625_v30  ;;  %v2887_v30 = vld [vmem:[%s4021_s9 + $0x30] sm:$0xff] }
 0x68e   :  { %v2633_v31 = vpop.permute.xlu0 %2632 }
 0x68f   :  { %v2649_v32 = vsel %vm2648_vm4, %v2646_v1, %v2633_v31  ;;  %v2888_v31 = vld [vmem:[%s4021_s9 + $0x38] sm:$0xff] }
 0x690   :  { %v3303_v1 = vpack.c.bf16 %v2888_v31, %v2887_v30 }
 0x692   :  { %v2641_v33 = vpop.permute.xlu0 %2640  ;;  %3304 = vmatprep.subr.bf16.mxu0 %v3303_v1 }
 0x693   :  { %v2652_v42 = vsel %vm2651_vm5, %v2649_v32, %v2641_v33  ;;  %3306 = vmatpush3.bf16.msra.mxu0 %v3303_v1  ;;  %v2889_v32 = vld [vmem:[%s4021_s9 + $0x40] sm:$0xff]  ;;  %v2890_v33 = vld [vmem:[%s4021_s9 + $0x48] sm:$0xff] }
 0x694   :  { %3218 = vmatprep.mubr.msk.f32.mxu1 %vm43_vm0, %v2652_v42  ;;  %v3307_v42 = vpack.c.bf16 %v2890_v33, %v2889_v32 }
 0x696   :  { %3308 = vmatprep.subr.bf16.mxu0 %v3307_v42 }
 0x697   :  { %3310 = vmatpush3.bf16.msra.mxu0 %v3307_v42 }
 0x6d0   :  { %v2627_v2 = vpop.permute.xlu1 %2626 }
 0x6d1   :  { %v2647_v35 = vsel %vm1069_vm2, %v2618_v57, %v2627_v2  ;;  %v2891_v2 = vld [vmem:[%s4021_s9 + $0x50] sm:$0xff] }
 0x6d4   :  { %v2635_v39 = vpop.permute.xlu1 %2634 }
 0x6d5   :  { %v2650_v36 = vsel %vm2648_vm4, %v2647_v35, %v2635_v39  ;;  %v2892_v39 = vld [vmem:[%s4021_s9 + $0x58] sm:$0xff] }
 0x6d6   :  { %v3311_v35 = vpack.c.bf16 %v2892_v39, %v2891_v2 }
 0x6d8   :  { %v2643_v37 = vpop.permute.xlu1 %2642  ;;  %3312 = vmatprep.subr.bf16.mxu0 %v3311_v35 }
 0x6d9   :  { %v2653_v26 = vsel %vm2651_vm5, %v2650_v36, %v2643_v37  ;;  %3314 = vmatpush3.bf16.msra.mxu0 %v3311_v35  ;;  %v2893_v36 = vld [vmem:[%s4021_s9 + $0x60] sm:$0xff]  ;;  %v2894_v37 = vld [vmem:[%s4021_s9 + $0x68] sm:$0xff] }
 0x6da   :  { %3219 = vmatmul.mubr.msk.f32.vlgmr.msra.gmra.mrb[20].mxu1 %vm43_vm0, %v2653_v26  ;;  %v3315_v26 = vpack.c.bf16 %v2894_v37, %v2893_v36 }
 0x6db   :  { %3286 = vmatpush3.bf16.msra.mxu1 %v3283_v40 }
 0x6dc   :  { %3288 = vmatprep.subr.bf16.mxu1 %v3287_v48  ;;  %3316 = vmatprep.subr.bf16.mxu0 %v3315_v26 }
 0x6dd   :  { %3318 = vmatpush3.bf16.msra.mxu0 %v3315_v26 }
 0x6df   :  { %3290 = vmatpush3.bf16.msra.mxu1 %v3287_v48 }
 0x7ad   :  { %v3220_v0 = vpop.f32.mrb[20].mxu1 }
 0x7ae   :  { %v2743_v25 = vadd.f32 %v3220_v0, %v3044_v34  ;;  %v2737_v38 = vpop.f32.mrb[21].mxu1  ;;  %v2896_v0 = vld [vmem:[%s4021_s9 + $0x78] sm:$0xff] }
 0x7af   :  { %v2738_v43 = vadd.f32 %v3044_v34, %v2737_v38  ;;  %v2895_v34 = vld [vmem:[%s4021_s9 + $0x70] sm:$0xff]  ;;  %v3047_v38 = vld [vmem:[%s4020_s8] ss:$0 sm:$0xff] }
 0x7b0   :  { %v3906_v51 = vadd.f32 %v3382_v49, %v2743_v25  ;;  %v3319_v25 = vpack.c.bf16 %v2896_v0, %v2895_v34 }
 0x7b1   :  { %v3911_v54 = vadd.f32 %v3383_v10, %v2738_v43 }
 0x7b2   :  { %v2751_v55 = vsel %vm43_vm0, %v3906_v51, 0.0  ;;  %3320 = vmatprep.subr.bf16.mxu0 %v3319_v25 }
 0x7b3   :  { %2752 = vadd.xlane.f32.xlu1 %v2751_v55  ;;  %v2748_v56 = vsel %vm43_vm0, %v3911_v54, 0.0  ;;  %3322 = vmatpush3.bf16.msra.mxu0 %v3319_v25 }
 0x7b4   :  { %2749 = vadd.xlane.f32.xlu0 %v2748_v56 }
 0x840   :  { %v2753_v59 = vpop.xlane.xlu1 %2752 }
 0x841   :  { %v2755_v61 = vmul.f32 0.03125, %v2753_v59  ;;  %v2750_v63 = vpop.xlane.xlu0 %2749 }
 0x842   :  { %v2754_v3 = vmul.f32 0.03125, %v2750_v63 }
 0x843   :  { %v2757_v4 = vsub.f32 %v3906_v51, %v2755_v61 }
 0x844   :  { %v2756_v5 = vsub.f32 %v3911_v54, %v2754_v3 }
 0x845   :  { %v2759_v44 = vmul.f32 %v2757_v4, %v2757_v4 }
 0x846   :  { %v2758_v6 = vmul.f32 %v2756_v5, %v2756_v5 }
 0x847   :  { %v2763_v58 = vsel %vm43_vm0, %v2759_v44, 0.0 }
 0x848   :  { %v2760_v7 = vsel %vm43_vm0, %v2758_v6, 0.0 }
 0x849   :  { %2761 = vadd.xlane.f32.xlu0 %v2760_v7 }
 0x84d   :  { %2764 = vadd.xlane.f32.xlu0 %v2763_v58  ;;  %v3050_v58 = vld [vmem:[%s4022_s10] ss:$0 sm:$0xff] }
 0x8d6   :  { %v2762_v13 = vpop.xlane.xlu0 %2761 }
 0x8d7   :  { %v2766_v14 = vmul.f32 0.03125, %v2762_v13 }
 0x8d9   :  { %v2768_v15 = vadd.f32 1e-05, %v2766_v14 }
 0x8da   :  { %v2765_v18 = vpop.xlane.xlu0 %2764 }
 0x8db   :  { %3374 = vrsqrt.f32 %v2768_v15  ;;  %v2767_v16 = vmul.f32 0.03125, %v2765_v18 }
 0x8dd   :  { %v2769_v17 = vadd.f32 1e-05, %v2767_v16 }
 0x8df   :  { %3376 = vrsqrt.f32 %v2769_v17 }
 0x8e5   :  { %v3375_v60 = vpop.eup %3374 }
 0x8e6   :  { %v2772_v19 = vmul.f32 %v3375_v60, %v2756_v5 }
 0x8e8   :  { %v2774_v21 = vmul.f32 %v3384_v20, %v2772_v19 }
 0x8e9   :  { %v3377_v22 = vpop.eup %3376 }
 0x8ea   :  { %v2773_v23 = vmul.f32 %v3377_v22, %v2757_v4  ;;  %v2776_v28 = vadd.f32 %v3385_v27, %v2774_v21 }
 0x8ec   :  { %v2775_v29 = vmul.f32 %v3384_v20, %v2773_v23  ;;  %3229 = vmatprep.mubr.msk.f32.mxu1 %vm43_vm0, %v2776_v28 }
 0x8ee   :  { %v2777_v57 = vadd.f32 %v3385_v27, %v2775_v29 }
 0x8f0   :  { %3230 = vmatmul.mubr.msk.f32.vlgmr.msra.gmra.mrb[22].mxu1 %vm43_vm0, %v2777_v57 }
 0x9c3   :  { %v3231_v43 = vpop.f32.mrb[22].mxu1 }
 0x9c4   :  { %v2867_v49 = vadd.f32 %v3231_v43, %v3047_v38  ;;  %v2861_v10 = vpop.f32.mrb[23].mxu1 }
 0x9c5   :  { %v2862_v55 = vadd.f32 %v3047_v38, %v2861_v10 }
 0x9c6   :  { %v2874_v56 = vmul.f32 0.70710677, %v2867_v49  ;;  %v2871_v6 = vmul.f32 0.5, %v2867_v49 }
 0x9c7   :  { %v2873_v59 = vmul.f32 0.70710677, %v2862_v55  ;;  %v2870_v4 = vmul.f32 0.5, %v2862_v55 }
 0x9c8   :  { %3378 = verf.f32 %v2874_v56 }
 0x9c9   :  { %3380 = verf.f32 %v2873_v59 }
 0x9d2   :  { %v3379_v61 = vpop.eup %3378 }
 0x9d3   :  { %v3381_v63 = vpop.eup %3380  ;;  %v2878_v3 = vadd.f32 1.0, %v3379_v61 }
 0x9d4   :  { %v2877_v5 = vadd.f32 1.0, %v3381_v63 }
 0x9d5   :  { %v2880_v44 = vmul.f32 %v2878_v3, %v2871_v6 }
 0x9d6   :  { %v2879_v7 = vmul.f32 %v2877_v5, %v2870_v4 }
 0x9d8   :  { %3264 = vmatprep.mubr.f32.mxu0 %v2879_v7 }
 0x9d9   :  { %3265 = vmatmul.mubr.f32.vlgmr.msra.gmra.mrb[14].mxu0 %v2880_v44 }
 0xaac   :  { %v3266_v24 = vpop.f32.mrb[14].mxu0 }
 0xaad   :  { %v2976_v45 = vadd.f32 %v3266_v24, %v3050_v58  ;;  %v2970_v40 = vpop.f32.mrb[15].mxu0 }
 0xaae   :  { %v2971_v47 = vadd.f32 %v3050_v58, %v2970_v40 }
 0xaaf   :  { %v2980_v62 = vadd.f32 %v2976_v45, %v3906_v51 }
 0xab0   :  { %v2979_v48 = vadd.f32 %v2971_v47, %v3911_v54 }
 0xab1   :  { %2982 = vst.msk [vmem:[#allocation2 + $0x8] sm:$0xff] %vm43_vm0, %v2980_v62 }
 0xab2   :  { %2981 = vst.msk [vmem:[#allocation2] sm:$0xff] %vm43_vm0, %v2979_v48 }
 0xab3   :  { %3397 = shalt.err (!%p3394_p4)
}
 0xab4   :  { %s3398_s0 = scalar_lea.hbm %s4023_s11, 256 }
 0xab5   :  { %p3399_p5 = scmp.ne.s32.totalorder %s4023_s11, %s3398_s0  ;;  %p3402_p6 = scmp.lt.u32.totalorder %s3398_s0, %s4023_s11 }
 0xab7   :  { %p3404_p7 = pnand %p3402_p6, %p3399_p5 }
 0xab9   :  { %3407 = shalt.err (!%p3404_p7)
}
 0xaba   :  { %s3424_s2 = smov 128  }
 0xabb   :  { %2994 = dma.vmem_to_hbm [thread:$0]  %s2989_s12, 256, %s4023_s11, [#allocation3], %s3424_s2, %s3424_s2, %s3420_s19  }
 0xabc   :  { %3408 = dma.done.wait [#allocation3], 256  }
 0xabd   :  { %3409 = vsyncadd [#allocation3], 4294967040 }
 0xabe   :  { %2998 = vsyncpa [#allocation3], 1 }

</bundles_post_ra>
